<compile_context>
chip_gen: v7x
topology: tpu7x:2x2x1
jax: 0.10.0
libtpu: 0.0.40
codegen_flags: <defaults>
</compile_context>

<pallas_src>
import math

import jax
import jax.numpy as jnp
from jax.experimental import pallas as pl
from jax.experimental.pallas import tpu as pltpu

SOFT_PLUS_BETA = 20.0
EPSILON_MARGIN = 1e-16
# softplus(20/20) with beta=1 (same constant as the torch code)
THRESHOLD_OUT = math.log1p(math.exp(1.0))

SMALL_N_FAST_PATH = 256  # below this, XLA beats pallas_call fixed overhead


# ----------------------------------------------------------------------------
# parameter setup glue (mirrors White.__init__ / lower_bounded_tensor).
# This is ny-element math: it runs in XLA, NOT inside the Pallas kernels.
# ----------------------------------------------------------------------------
def inverse_softplus(x, beta=SOFT_PLUS_BETA, eps=EPSILON_MARGIN):
    return jnp.where(
        x > THRESHOLD_OUT,
        x,
        jnp.log(jnp.exp((x - eps) * beta) - 1.0) / beta,
    )


def make_white_raw_param(dim_out, c=0.01, dtype=jnp.float32):
    param = c * jnp.ones((dim_out,), dtype=dtype)
    return inverse_softplus(param).astype(dtype)


def lower_bounded(p):
    """softplus(p, beta=20) + eps, replicating torch's threshold behaviour."""
    z = p * SOFT_PLUS_BETA
    sp = jnp.log1p(jnp.exp(jnp.minimum(z, 20.0))) / SOFT_PLUS_BETA
    return jnp.where(z > 20.0, p, sp) + EPSILON_MARGIN


# ----------------------------------------------------------------------------
# Pallas kernels.
# ----------------------------------------------------------------------------
def white_full_kernel(c_ref, o_ref):
    """One (ny, TM, TN) tile of K = c * I_n.

    c_ref: SMEM (ny,) float32, already softplus-bounded and pre-scaled by the
           `all(x == y)` flag in the wrapper.
    The diagonal test uses global offsets so rectangular / full-row tiles work.
    """
    i = pl.program_id(0)  # row-block index
    j = pl.program_id(1)  # col-block index
    ny, tm, tn = o_ref.shape
    row0 = i * tm
    col0 = j * tn

    # Does the diagonal band intersect this tile at all?
    has_diag = jnp.logical_and(row0 < col0 + tn, col0 < row0 + tm)

    @pl.when(has_diag)
    def _diag_tile():
        g_row = jax.lax.broadcasted_iota(jnp.int32, (tm, tn), 0) + row0
        g_col = jax.lax.broadcasted_iota(jnp.int32, (tm, tn), 1) + col0
        mask = (g_row == g_col).astype(o_ref.dtype)  # one mask, reused per ch.
        for k in range(ny):  # ny is small and static -> unrolled
            o_ref[k, :, :] = mask * c_ref[k]

    @pl.when(jnp.logical_not(has_diag))
    def _off_diag_tile():
        o_ref[...] = jnp.zeros_like(o_ref)


def white_diag_kernel(c_ref, o_ref):
    """One (ny, TN) tile of K_diag = c broadcast along n — single full store."""
    ny, tn = o_ref.shape
    o_ref[...] = jnp.broadcast_to(c_ref[...], (ny, tn)).astype(o_ref.dtype)


# ----------------------------------------------------------------------------
# per-generation VMEM budgets and tile pickers.
# ----------------------------------------------------------------------------
def _vmem_budgets():
    """(double-buffered block budget, vmem_limit_bytes) from one chip source."""
    try:
        cap = int(pltpu.get_tpu_info().vmem_capacity_bytes)
    except Exception:  # pragma: no cover - conservative fallback (v7x per-TC)
        cap = 64 * 1024 * 1024
    # v5e/v6e (128 MiB): 64 MiB block budget, 80 MiB limit.
    # v7x   (64 MiB) : 40 MiB block budget, 56 MiB limit.
    block_budget = min((cap * 5) // 8, 64 * 1024 * 1024)
    vmem_limit = min(cap - 8 * 1024 * 1024, block_budget + 16 * 1024 * 1024)
    return block_budget, vmem_limit


def _pick_full_tiles(n, ny, block_budget_bytes):
    """(tm, tn) for the (ny, tm, tn) output block (double-buffered, f32)."""
    bpe = 4
    # Prefer full rows (tn = n): lane-dense, contiguous ny*tm*n*4-byte DMA runs.
    row_bytes = 2 * ny * n * bpe  # per unit of tm, double-buffered
    tm_cap = block_budget_bytes // max(row_bytes, 1)
    if tm_cap >= n:
        return n, n  # whole matrix fits in one block
    if tm_cap >= 128:
        return min((tm_cap // 128) * 128, n), n
    # Very large n: rectangular blocks with the widest lane extent that fits.
    tm = 128
    tn_cap = block_budget_bytes // (2 * ny * tm * bpe)
    tn = max(128, min((tn_cap // 128) * 128, n))
    return tm, tn


def _pick_diag_tile(n, ny, block_budget_bytes):
    if 2 * ny * n * 4 <= block_budget_bytes:
        return n
    cap = block_budget_bytes // (2 * ny * 4)
    return max(128, (cap // 128) * 128)


# ----------------------------------------------------------------------------
# wrapper (mirrors White.forward / White.white dispatch)
# ----------------------------------------------------------------------------
def white_forward(raw_param, x, y, diag=False):
    ny = raw_param.shape[0]
    n = x.shape[0] if x.ndim == 2 else x.shape[1]
    h = y.shape[0] if y.ndim == 2 else y.shape[1]
    dtype = jnp.float32

    # softplus lower bound computed once in XLA (ny elements).
    c = lower_bounded(raw_param.astype(dtype)).astype(dtype)  # (ny,)

    block_budget, vmem_limit = _vmem_budgets()

    if diag:
        assert x.shape == y.shape, "They should be same data."
        if n < SMALL_N_FAST_PATH:
            # overhead-dominated: one XLA broadcast is strictly cheaper.
            return jnp.broadcast_to(c[:, None], (ny, n)).astype(dtype)
        tile = _pick_diag_tile(n, ny, block_budget)
        return pl.pallas_call(
            white_diag_kernel,
            out_shape=jax.ShapeDtypeStruct((ny, n), dtype),
            grid=(pl.cdiv(n, tile),),
            in_specs=[pl.BlockSpec((ny, 1), lambda i: (0, 0))],
            out_specs=pl.BlockSpec((ny, tile), lambda i: (0, i)),
            compiler_params=pltpu.CompilerParams(
                dimension_semantics=("parallel",),
                vmem_limit_bytes=vmem_limit,
            ),
            cost_estimate=pl.CostEstimate(
                flops=0, transcendentals=0, bytes_accessed=ny * n * 4),
        )(c.reshape(ny, 1))

    if x.shape == y.shape:
        # torch semantics: exact element-wise equality (NaN anywhere -> zeros).
        if x is y:
            c_eff = c  # trace-time identity: skip the XLA all-reduce entirely
        else:
            same = jnp.all(x.astype(dtype) == y.astype(dtype))
            c_eff = jnp.where(same, c, jnp.zeros_like(c))  # fold flag into c

        if n < SMALL_N_FAST_PATH:
            # overhead-dominated: c * eye in XLA wins outright.
            eye = jnp.eye(n, dtype=dtype)
            return (c_eff[:, None, None] * eye[None, :, :]).astype(dtype)

        tm, tn = _pick_full_tiles(n, ny, block_budget)
        return pl.pallas_call(
            white_full_kernel,
            out_shape=jax.ShapeDtypeStruct((ny, n, n), dtype),
            grid=(pl.cdiv(n, tm), pl.cdiv(n, tn)),
            in_specs=[pl.BlockSpec(memory_space=pltpu.MemorySpace.SMEM)],
            out_specs=pl.BlockSpec((ny, tm, tn), lambda i, j: (0, i, j)),
            compiler_params=pltpu.CompilerParams(
                dimension_semantics=("parallel", "parallel"),
                vmem_limit_bytes=vmem_limit,
            ),
            cost_estimate=pl.CostEstimate(
                flops=0, transcendentals=0, bytes_accessed=ny * n * n * 4),
        )(c_eff)

    # shapes differ -> zeros (ny, n, h); pure glue, no compute to offload.
    return jnp.zeros((ny, n, h), dtype)


# ----------------------------------------------------------------------------
if __name__ == "__main__":
    dim_in, dim_out = 3, 4     # nx, ny
    n = 384                    # number of samples (exercises the Pallas paths)
    c_noise = 0.01

    key = jax.random.PRNGKey(0)
    kx, ky = jax.random.split(key)
    x = jax.random.normal(kx, (n, dim_in), dtype=jnp.float32)
    y_same = x
    y_diff = jax.random.normal(ky, (n, dim_in), dtype=jnp.float32)
    x_small = x[:8]

    raw_param = make_white_raw_param(dim_out, c_noise)

    # case 1: x is y             ->  c * I, repeated over ny (Pallas full kernel)
    K_same = jax.block_until_ready(white_forward(raw_param, x, y_same))
    # case 2: x != y (same shape) -> zeros (Pallas full kernel, flag folded in c)
    K_diff = jax.block_until_ready(white_forward(raw_param, x, y_diff))
    # case 3: diag               -> c * ones(ny, n) (Pallas diag kernel)
    K_diag = jax.block_until_ready(white_forward(raw_param, x, x, diag=True))
    # case 4: small-n fast path (XLA)
    K_small = jax.block_until_ready(white_forward(raw_param, x_small, x_small))
    # case 5: different shapes   -> zeros (ny, n, h)
    K_mismatch = jax.block_until_ready(
        white_forward(raw_param, x, y_diff[: n // 2]))

    # sanity checks against the reference semantics
    eye = jnp.eye(n, dtype=jnp.float32)
    ref_same = c_noise * jnp.broadcast_to(eye, (dim_out, n, n))
    assert K_same.shape == (dim_out, n, n)
    assert jnp.allclose(K_same, ref_same, atol=1e-5)
    assert K_diff.shape == (dim_out, n, n)
    assert jnp.allclose(K_diff, 0.0)
    assert K_diag.shape == (dim_out, n)
    assert jnp.allclose(K_diag, c_noise, atol=1e-5)
    assert K_small.shape == (dim_out, 8, 8)
    assert jnp.allclose(K_small, c_noise * jnp.eye(8)[None], atol=1e-5)
    assert K_mismatch.shape == (dim_out, n, n // 2)
    assert jnp.allclose(K_mismatch, 0.0)

    print("KERNEL_OK")
</pallas_src>

<mosaic_0001>
module attributes {stable_mosaic.version = 11 : i64} {
  func.func @white_full_kernel(%arg0: i32, %arg1: i32, %arg2: memref<4xf32, #tpu.memory_space<smem>>, %arg3: memref<4x384x384xf32, #tpu.memory_space<vmem>>) attributes {dimension_semantics = [#tpu.dimension_semantics<parallel>, #tpu.dimension_semantics<parallel>], iteration_bounds = array<i64: 1, 1>, scalar_prefetch = 0 : i64, scratch_operands = 0 : i64, tpu.core_type = #tpu.core_type<tc>, window_params = [{transform_indices = @transform_0, window_bounds = array<i64: 4>}, {transform_indices = @transform_1, window_bounds = array<i64: 4, 384, 384>}]} {
    %c384_i32 = arith.constant 384 : i32
    %0 = arith.muli %arg0, %c384_i32 : i32
    %c384_i32_0 = arith.constant 384 : i32
    %1 = arith.muli %arg1, %c384_i32_0 : i32
    %c384_i32_1 = arith.constant 384 : i32
    %2 = arith.addi %1, %c384_i32_1 : i32
    %3 = arith.cmpi slt, %0, %2 : i32
    %c384_i32_2 = arith.constant 384 : i32
    %4 = arith.addi %0, %c384_i32_2 : i32
    %5 = arith.cmpi slt, %1, %4 : i32
    %6 = arith.andi %3, %5 : i1
    %7 = arith.extui %6 : i1 to i32
    %c0_i32 = arith.constant 0 : i32
    %8 = arith.cmpi ne, %7, %c0_i32 : i32
    scf.if %8 {
      %12 = tpu.iota {dimensions = array<i32: 0>} : vector<384x384xi32>
      %13 = vector.broadcast %0 : i32 to vector<384x384xi32>
      %14 = arith.addi %12, %13 : vector<384x384xi32>
      %15 = tpu.iota {dimensions = array<i32: 1>} : vector<384x384xi32>
      %16 = vector.broadcast %1 : i32 to vector<384x384xi32>
      %17 = arith.addi %15, %16 : vector<384x384xi32>
      %18 = arith.cmpi eq, %14, %17 : vector<384x384xi32>
      %19 = arith.extui %18 : vector<384x384xi1> to vector<384x384xi32>
      %20 = arith.sitofp %19 : vector<384x384xi32> to vector<384x384xf32>
      %c0 = arith.constant 0 : index
      %21 = memref.load %arg2[%c0] : memref<4xf32, #tpu.memory_space<smem>>
      %22 = vector.broadcast %21 : f32 to vector<384x384xf32>
      %23 = arith.mulf %20, %22 : vector<384x384xf32>
      %c0_4 = arith.constant 0 : index
      %c0_5 = arith.constant 0 : index
      %c0_6 = arith.constant 0 : index
      %24 = vector.load %arg3[%c0_4, %c0_5, %c0_6] : memref<4x384x384xf32, #tpu.memory_space<vmem>>, vector<1x384x384xf32>
      %25 = vector.shape_cast %24 : vector<1x384x384xf32> to vector<384x384xf32>
      %26 = vector.shape_cast %23 : vector<384x384xf32> to vector<1x384x384xf32>
      tpu.vector_store %arg3[%c0_4, %c0_5, %c0_6], %26 {strides = array<i32>} : memref<4x384x384xf32, #tpu.memory_space<vmem>>, vector<1x384x384xf32>,
      %c1 = arith.constant 1 : index
      %27 = memref.load %arg2[%c1] : memref<4xf32, #tpu.memory_space<smem>>
      %28 = vector.broadcast %27 : f32 to vector<384x384xf32>
      %29 = arith.mulf %20, %28 : vector<384x384xf32>
      %c1_7 = arith.constant 1 : index
      %c0_8 = arith.constant 0 : index
      %c0_9 = arith.constant 0 : index
      %30 = vector.load %arg3[%c1_7, %c0_8, %c0_9] : memref<4x384x384xf32, #tpu.memory_space<vmem>>, vector<1x384x384xf32>
      %31 = vector.shape_cast %30 : vector<1x384x384xf32> to vector<384x384xf32>
      %32 = vector.shape_cast %29 : vector<384x384xf32> to vector<1x384x384xf32>
      tpu.vector_store %arg3[%c1_7, %c0_8, %c0_9], %32 {strides = array<i32>} : memref<4x384x384xf32, #tpu.memory_space<vmem>>, vector<1x384x384xf32>,
      %c2 = arith.constant 2 : index
      %33 = memref.load %arg2[%c2] : memref<4xf32, #tpu.memory_space<smem>>
      %34 = vector.broadcast %33 : f32 to vector<384x384xf32>
      %35 = arith.mulf %20, %34 : vector<384x384xf32>
      %c2_10 = arith.constant 2 : index
      %c0_11 = arith.constant 0 : index
      %c0_12 = arith.constant 0 : index
      %36 = vector.load %arg3[%c2_10, %c0_11, %c0_12] : memref<4x384x384xf32, #tpu.memory_space<vmem>>, vector<1x384x384xf32>
      %37 = vector.shape_cast %36 : vector<1x384x384xf32> to vector<384x384xf32>
      %38 = vector.shape_cast %35 : vector<384x384xf32> to vector<1x384x384xf32>
      tpu.vector_store %arg3[%c2_10, %c0_11, %c0_12], %38 {strides = array<i32>} : memref<4x384x384xf32, #tpu.memory_space<vmem>>, vector<1x384x384xf32>,
      %c3 = arith.constant 3 : index
      %39 = memref.load %arg2[%c3] : memref<4xf32, #tpu.memory_space<smem>>
      %40 = vector.broadcast %39 : f32 to vector<384x384xf32>
      %41 = arith.mulf %20, %40 : vector<384x384xf32>
      %c3_13 = arith.constant 3 : index
      %c0_14 = arith.constant 0 : index
      %c0_15 = arith.constant 0 : index
      %42 = vector.load %arg3[%c3_13, %c0_14, %c0_15] : memref<4x384x384xf32, #tpu.memory_space<vmem>>, vector<1x384x384xf32>
      %43 = vector.shape_cast %42 : vector<1x384x384xf32> to vector<384x384xf32>
      %44 = vector.shape_cast %41 : vector<384x384xf32> to vector<1x384x384xf32>
      tpu.vector_store %arg3[%c3_13, %c0_14, %c0_15], %44 {strides = array<i32>} : memref<4x384x384xf32, #tpu.memory_space<vmem>>, vector<1x384x384xf32>,
    } else {
    }
    %true = arith.constant true
    %9 = arith.xori %6, %true : i1
    %10 = arith.extui %9 : i1 to i32
    %c0_i32_3 = arith.constant 0 : i32
    %11 = arith.cmpi ne, %10, %c0_i32_3 : i32
    scf.if %11 {
      %cst = arith.constant 0.000000e+00 : f32
      %12 = vector.broadcast %cst : f32 to vector<4x384x384xf32>
      %c0 = arith.constant 0 : index
      %c0_4 = arith.constant 0 : index
      %c0_5 = arith.constant 0 : index
      %13 = vector.load %arg3[%c0, %c0_4, %c0_5] : memref<4x384x384xf32, #tpu.memory_space<vmem>>, vector<4x384x384xf32>
      tpu.vector_store %arg3[%c0, %c0_4, %c0_5], %12 {strides = array<i32>} : memref<4x384x384xf32, #tpu.memory_space<vmem>>, vector<4x384x384xf32>,
    } else {
    }
    return
  }
  func.func @transform_0(%arg0: i32, %arg1: i32) -> i32 {
    %c0_i32 = arith.constant 0 : i32
    %c0_i32_0 = arith.constant 0 : i32
    return %c0_i32 : i32
  }
  func.func @transform_1(%arg0: i32, %arg1: i32) -> (i32, i32, i32) {
    %c0_i32 = arith.constant 0 : i32
    %c0_i32_0 = arith.constant 0 : i32
    return %c0_i32, %arg0, %arg1 : i32, i32, i32
  }
}

</mosaic_0001>

<bundles_post_ra>
// kernel: tpu_custom_call.1
= control target key start
LH: loop header
LB: loop body
LE: loop exit
PB: predicated region body
PF: predicated region fallthrough
CT: control target
= control target key end

     0   :  { %6 = vsyncpa [#allocation4], 0  ;;  %s3562_s0 = inlined_call_operand.hbm [shape: f32[4], index: 0, kind: input, shape index: {}]   ;;  %s3563_s1 = inlined_call_operand.hbm [shape: f32[4,384,384], index: 1, kind: output, shape index: {}]  }
   0x1   :  { %7 = vsyncpa [#allocation3], 0  ;;  %s2383_s8 = scalar_lea.hbm %s3562_s0, 16 }
   0x2   :  { %p2384_p0 = scmp.ne.s32.totalorder %s3562_s0, %s2383_s8  ;;  %p2387_p1 = scmp.lt.u32.totalorder %s2383_s8, %s3562_s0 }
   0x4   :  { %p2389_p2 = pnand %p2387_p1, %p2384_p0 }
   0x6   :  { %2392 = shalt.err (!%p2389_p2)
}
   0x7   :  { %s2419_s13 = smov [#allocation2]  }
   0x8   :  { %15 = dma.hbm_to_smem %s3562_s0, 16, %s2419_s13, [#allocation4]  }
   0x9   :  { %2415 = dma.done.wait [#allocation4], 16  }
   0xa   :  { %2416 = vsyncadd [#allocation4], 4294967280 }
   0xb   :  { %19 = sfence }
   0xc   :  { %v30_v0 = vlaneseq  ;;  %s568_s16 = sld [smem:[#allocation2]]  ;;  %v2420_v6 = vmov 0.0   ;;  %s2832_s0 = sld [smem:[#allocation2 + $0x1]] }
   0xd   :  { %s2842_s17 = sld [smem:[#allocation2 + $0x2]]  ;;  %s3270_s18 = sld [smem:[#allocation2 + $0x3]] }
   0xe   :  { %v2446_v1 = vshrl.u32 %v30_v0, 7  ;;  %v2448_v2 = vand.u32 127, %v30_v0  ;;  %s2421_s19 = smov [#allocation5]  }
   0xf   :  { %s2315_s20 = sshll.u32 %s2421_s19, 4  ;;  %s2316_s20 = int_to_ptr.vmem [resolvable:$true] %s2315_s20 }
  0x10   :  { %vm136_vm0 = vcmp.eq.s32.totalorder %v2446_v1, %v2448_v2  ;;  %v32_v3 = vadd.s32 8, %v2446_v1  ;;  %v33_v4 = vadd.s32 16, %v2446_v1  ;;  %v34_v5 = vadd.s32 24, %v2446_v1  ;;  %s2393_s21 = scalar_lea.vmem %s2316_s20, 73728  ;;  %p2398_p4 = scmp.lt.s32.totalorder %s2316_s20, %s2316_s20 }
  0x11   :  { %v2456_v7 = vsel %vm136_vm0, 1.0, %v2420_v6  ;;  %v2459_v8 = vadd.s32 32, %v2446_v1  ;;  %v2462_v9 = vadd.s32 40, %v2446_v1  ;;  %v2465_v10 = vadd.s32 48, %v2446_v1  ;;  %p2394_p3 = scmp.ne.s32.totalorder %s2316_s20, %s2393_s21  ;;  %p2399_p5 = scmp.lt.s32.totalorder %s2393_s21, %s2393_s21 }
  0x12   :  { %v2467_v11 = vstv %s568_s16  ;;  %vm139_vm1 = vcmp.eq.s32.totalorder %v32_v3, %v2448_v2  ;;  %vm142_vm2 = vcmp.eq.s32.totalorder %v33_v4, %v2448_v2  ;;  %vm145_vm3 = vcmp.eq.s32.totalorder %v34_v5, %v2448_v2 }
  0x13   :  { %v570_v12 = vmul.f32 %v2456_v7, %v2467_v11  ;;  %v2475_v13 = vmul.f32 0.0, %v2467_v11  ;;  %v2478_v14 = vsel %vm139_vm1, 1.0, %v2420_v6  ;;  %v2481_v15 = vsel %vm142_vm2, 1.0, %v2420_v6  ;;  %p2400_p6 = por %p2399_p5, %p2398_p4 }
  0x14   :  { %v2485_v16 = vmul.f32 %v2478_v14, %v2467_v11  ;;  %v2489_v17 = vmul.f32 %v2481_v15, %v2467_v11  ;;  %v2492_v18 = vsel %vm145_vm3, 1.0, %v2420_v6  ;;  %vm148_vm4 = vcmp.eq.s32.totalorder %v2459_v8, %v2448_v2 }
  0x15   :  { %714 = vst [vmem:[#allocation5] sm:$0xff] %v570_v12  ;;  %715 = vst [vmem:[#allocation5 + $0x8] sm:$0xff] %v2475_v13  ;;  %v579_v19 = vmul.f32 %v2492_v18, %v2467_v11  ;;  %v2598_v20 = vsel %vm148_vm4, 1.0, %v2420_v6  ;;  %vm151_vm5 = vcmp.eq.s32.totalorder %v2462_v9, %v2448_v2  ;;  %vm154_vm6 = vcmp.eq.s32.totalorder %v2465_v10, %v2448_v2  ;;  %p2401_p7 = pnand %p2400_p6, %p2394_p3 }
  0x16   :  { %716 = vst [vmem:[#allocation5 + $0x10] sm:$0xff] %v2475_v13  ;;  %718 = vst [vmem:[#allocation5 + $0x20] sm:$0xff] %v2475_v13  ;;  %v582_v21 = vmul.f32 %v2598_v20, %v2467_v11  ;;  %v2609_v22 = vsel %vm151_vm5, 1.0, %v2420_v6  ;;  %v2612_v23 = vsel %vm154_vm6, 1.0, %v2420_v6  ;;  %v38_v24 = vadd.s32 56, %v2446_v1 }
  0x17   :  { %719 = vst [vmem:[#allocation5 + $0x28] sm:$0xff] %v2475_v13  ;;  %721 = vst [vmem:[#allocation5 + $0x38] sm:$0xff] %v2475_v13  ;;  %v585_v25 = vmul.f32 %v2609_v22, %v2467_v11  ;;  %v588_v26 = vmul.f32 %v2612_v23, %v2467_v11  ;;  %v39_v27 = vadd.s32 64, %v2446_v1  ;;  %v40_v28 = vadd.s32 72, %v2446_v1 }
  0x18   :  { %722 = vst [vmem:[#allocation5 + $0x40] sm:$0xff] %v2475_v13  ;;  %724 = vst [vmem:[#allocation5 + $0x50] sm:$0xff] %v2475_v13  ;;  %vm157_vm7 = vcmp.eq.s32.totalorder %v38_v24, %v2448_v2  ;;  %v41_v29 = vadd.s32 80, %v2446_v1  ;;  %v42_v30 = vadd.s32 88, %v2446_v1  ;;  %v43_v31 = vadd.s32 96, %v2446_v1 }
  0x19   :  { %725 = vst [vmem:[#allocation5 + $0x58] sm:$0xff] %v2475_v13  ;;  %727 = vst [vmem:[#allocation5 + $0x68] sm:$0xff] %v2475_v13  ;;  %v2626_v32 = vsel %vm157_vm7, 1.0, %v2420_v6  ;;  %vm160_vm8 = vcmp.eq.s32.totalorder %v39_v27, %v2448_v2  ;;  %vm163_vm9 = vcmp.eq.s32.totalorder %v40_v28, %v2448_v2  ;;  %v44_v33 = vadd.s32 104, %v2446_v1 }
  0x1a   :  { %728 = vst [vmem:[#allocation5 + $0x70] sm:$0xff] %v2475_v13  ;;  %730 = vst [vmem:[#allocation5 + $0x80] sm:$0xff] %v2475_v13  ;;  %v591_v34 = vmul.f32 %v2626_v32, %v2467_v11  ;;  %v2634_v35 = vsel %vm160_vm8, 1.0, %v2420_v6  ;;  %v2637_v36 = vsel %vm163_vm9, 1.0, %v2420_v6  ;;  %vm166_vm10 = vcmp.eq.s32.totalorder %v41_v29, %v2448_v2 }
  0x1b   :  { %731 = vst [vmem:[#allocation5 + $0x88] sm:$0xff] %v2475_v13  ;;  %733 = vst [vmem:[#allocation5 + $0x98] sm:$0xff] %v2475_v13  ;;  %v594_v37 = vmul.f32 %v2634_v35, %v2467_v11  ;;  %v597_v38 = vmul.f32 %v2637_v36, %v2467_v11  ;;  %v2645_v39 = vsel %vm166_vm10, 1.0, %v2420_v6  ;;  %vm169_vm11 = vcmp.eq.s32.totalorder %v42_v30, %v2448_v2 }
  0x1c   :  { %734 = vst [vmem:[#allocation5 + $0xa0] sm:$0xff] %v2475_v13  ;;  %736 = vst [vmem:[#allocation5 + $0xb0] sm:$0xff] %v2475_v13  ;;  %v600_v40 = vmul.f32 %v2645_v39, %v2467_v11  ;;  %v2651_v41 = vsel %vm169_vm11, 1.0, %v2420_v6  ;;  %vm172_vm12 = vcmp.eq.s32.totalorder %v43_v31, %v2448_v2  ;;  %vm175_vm13 = vcmp.eq.s32.totalorder %v44_v33, %v2448_v2 }
  0x1d   :  { %737 = vst [vmem:[#allocation5 + $0xb8] sm:$0xff] %v2475_v13  ;;  %739 = vst [vmem:[#allocation5 + $0xc8] sm:$0xff] %v2475_v13  ;;  %v603_v42 = vmul.f32 %v2651_v41, %v2467_v11  ;;  %v2658_v43 = vsel %vm172_vm12, 1.0, %v2420_v6  ;;  %v2661_v44 = vsel %vm175_vm13, 1.0, %v2420_v6  ;;  %v45_v45 = vadd.s32 112, %v2446_v1 }
  0x1e   :  { %740 = vst [vmem:[#allocation5 + $0xd0] sm:$0xff] %v2475_v13  ;;  %742 = vst [vmem:[#allocation5 + $0xe0] sm:$0xff] %v2475_v13  ;;  %v606_v46 = vmul.f32 %v2658_v43, %v2467_v11  ;;  %v609_v47 = vmul.f32 %v2661_v44, %v2467_v11  ;;  %v46_v48 = vadd.s32 120, %v2446_v1  ;;  %v47_v49 = vadd.s32 128, %v2446_v1 }
  0x1f   :  { %743 = vst [vmem:[#allocation5 + $0xe8] sm:$0xff] %v2475_v13  ;;  %745 = vst [vmem:[#allocation5 + $0xf8] sm:$0xff] %v2475_v13  ;;  %vm178_vm14 = vcmp.eq.s32.totalorder %v45_v45, %v2448_v2  ;;  %v2672_v50 = vadd.s32 128, %v2448_v2  ;;  %v48_v51 = vadd.s32 136, %v2446_v1  ;;  %v49_v52 = vadd.s32 144, %v2446_v1 }
  0x20   :  { %746 = vst [vmem:[#allocation5 + $0x100] sm:$0xff] %v2475_v13  ;;  %748 = vst [vmem:[#allocation5 + $0x110] sm:$0xff] %v2475_v13  ;;  %v2677_v53 = vsel %vm178_vm14, 1.0, %v2420_v6  ;;  %vm181_vm15 = vcmp.eq.s32.totalorder %v46_v48, %v2448_v2  ;;  %v50_v54 = vadd.s32 152, %v2446_v1  ;;  %v51_v55 = vadd.s32 160, %v2446_v1 }
  0x21   :  { %749 = vst [vmem:[#allocation5 + $0x118] sm:$0xff] %v2475_v13  ;;  %751 = vst [vmem:[#allocation5 + $0x128] sm:$0xff] %v2475_v13  ;;  %v612_v56 = vmul.f32 %v2677_v53, %v2467_v11  ;;  %v2685_v57 = vsel %vm181_vm15, 1.0, %v2420_v6  ;;  %vm185_vm0 = vcmp.eq.s32.totalorder %v47_v49, %v2672_v50  ;;  %vm188_vm1 = vcmp.eq.s32.totalorder %v48_v51, %v2672_v50 }
  0x22   :  { %752 = vst [vmem:[#allocation5 + $0x130] sm:$0xff] %v2475_v13  ;;  %754 = vst [vmem:[#allocation5 + $0x140] sm:$0xff] %v2475_v13  ;;  %v615_v58 = vmul.f32 %v2685_v57, %v2467_v11  ;;  %v2692_v59 = vsel %vm185_vm0, 1.0, %v2420_v6  ;;  %v2695_v60 = vsel %vm188_vm1, 1.0, %v2420_v6  ;;  %vm191_vm2 = vcmp.eq.s32.totalorder %v49_v52, %v2672_v50 }
  0x23   :  { %755 = vst [vmem:[#allocation5 + $0x148] sm:$0xff] %v2475_v13  ;;  %757 = vst [vmem:[#allocation5 + $0x158] sm:$0xff] %v2475_v13  ;;  %v619_v61 = vmul.f32 %v2692_v59, %v2467_v11  ;;  %v622_v62 = vmul.f32 %v2695_v60, %v2467_v11  ;;  %v2703_v63 = vsel %vm191_vm2, 1.0, %v2420_v6  ;;  %vm194_vm3 = vcmp.eq.s32.totalorder %v50_v54, %v2672_v50 }
  0x24   :  { %758 = vst [vmem:[#allocation5 + $0x160] sm:$0xff] %v2475_v13  ;;  %760 = vst [vmem:[#allocation5 + $0x170] sm:$0xff] %v2475_v13  ;;  %v625_v0 = vmul.f32 %v2703_v63, %v2467_v11  ;;  %v2709_v3 = vsel %vm194_vm3, 1.0, %v2420_v6  ;;  %vm197_vm4 = vcmp.eq.s32.totalorder %v51_v55, %v2672_v50  ;;  %v52_v4 = vadd.s32 168, %v2446_v1 }
  0x25   :  { %761 = vst [vmem:[#allocation5 + $0x178] sm:$0xff] %v2475_v13  ;;  %762 = vst [vmem:[#allocation5 + $0x180] sm:$0xff] %v2475_v13  ;;  %v628_v5 = vmul.f32 %v2709_v3, %v2467_v11  ;;  %v2716_v8 = vsel %vm197_vm4, 1.0, %v2420_v6  ;;  %v53_v9 = vadd.s32 176, %v2446_v1  ;;  %v54_v10 = vadd.s32 184, %v2446_v1 }
  0x26   :  { %764 = vst [vmem:[#allocation5 + $0x190] sm:$0xff] %v2475_v13  ;;  %765 = vst [vmem:[#allocation5 + $0x198] sm:$0xff] %v2475_v13  ;;  %v631_v12 = vmul.f32 %v2716_v8, %v2467_v11  ;;  %vm200_vm5 = vcmp.eq.s32.totalorder %v52_v4, %v2672_v50  ;;  %v58_v31 = vadd.s32 216, %v2446_v1  ;;  %v62_v45 = vadd.s32 248, %v2446_v1 }
  0x27   :  { %767 = vst [vmem:[#allocation5 + $0x1a8] sm:$0xff] %v2475_v13  ;;  %768 = vst [vmem:[#allocation5 + $0x1b0] sm:$0xff] %v2475_v13  ;;  %vm203_vm6 = vcmp.eq.s32.totalorder %v53_v9, %v2672_v50  ;;  %vm206_vm7 = vcmp.eq.s32.totalorder %v54_v10, %v2672_v50  ;;  %v65_v4 = vadd.s32 272, %v2446_v1  ;;  %v69_v9 = vadd.s32 304, %v2446_v1 }
  0x28   :  { %770 = vst [vmem:[#allocation5 + $0x1c0] sm:$0xff] %v2475_v13  ;;  %771 = vst [vmem:[#allocation5 + $0x1c8] sm:$0xff] %v2475_v13  ;;  %v2734_v24 = vsel %vm203_vm6, 1.0, %v2420_v6  ;;  %vm218_vm11 = vcmp.eq.s32.totalorder %v58_v31, %v2672_v50  ;;  %vm230_vm15 = vcmp.eq.s32.totalorder %v62_v45, %v2672_v50 }
  0x29   :  { %773 = vst [vmem:[#allocation5 + $0x1d8] sm:$0xff] %v2475_v13  ;;  %774 = vst [vmem:[#allocation5 + $0x1e0] sm:$0xff] %v2475_v13 }
  0x2a   :  { %776 = vst [vmem:[#allocation5 + $0x1f0] sm:$0xff] %v2475_v13  ;;  %777 = vst [vmem:[#allocation5 + $0x1f8] sm:$0xff] %v2475_v13 }
  0x2b   :  { %779 = vst [vmem:[#allocation5 + $0x208] sm:$0xff] %v2475_v13  ;;  %780 = vst [vmem:[#allocation5 + $0x210] sm:$0xff] %v2475_v13 }
  0x2c   :  { %782 = vst [vmem:[#allocation5 + $0x220] sm:$0xff] %v2475_v13  ;;  %783 = vst [vmem:[#allocation5 + $0x228] sm:$0xff] %v2475_v13 }
  0x2d   :  { %785 = vst [vmem:[#allocation5 + $0x238] sm:$0xff] %v2475_v13  ;;  %786 = vst [vmem:[#allocation5 + $0x240] sm:$0xff] %v2475_v13 }
  0x2e   :  { %788 = vst [vmem:[#allocation5 + $0x250] sm:$0xff] %v2475_v13  ;;  %789 = vst [vmem:[#allocation5 + $0x258] sm:$0xff] %v2475_v13 }
  0x2f   :  { %791 = vst [vmem:[#allocation5 + $0x268] sm:$0xff] %v2475_v13  ;;  %792 = vst [vmem:[#allocation5 + $0x270] sm:$0xff] %v2475_v13 }
  0x30   :  { %794 = vst [vmem:[#allocation5 + $0x280] sm:$0xff] %v2475_v13  ;;  %795 = vst [vmem:[#allocation5 + $0x288] sm:$0xff] %v2475_v13 }
  0x31   :  { %797 = vst [vmem:[#allocation5 + $0x298] sm:$0xff] %v2475_v13  ;;  %798 = vst [vmem:[#allocation5 + $0x2a0] sm:$0xff] %v2475_v13 }
  0x32   :  { %800 = vst [vmem:[#allocation5 + $0x2b0] sm:$0xff] %v2475_v13  ;;  %801 = vst [vmem:[#allocation5 + $0x2b8] sm:$0xff] %v2475_v13 }
  0x33   :  { %803 = vst [vmem:[#allocation5 + $0x2c8] sm:$0xff] %v2475_v13  ;;  %804 = vst [vmem:[#allocation5 + $0x2d0] sm:$0xff] %v2475_v13 }
  0x34   :  { %806 = vst [vmem:[#allocation5 + $0x2e0] sm:$0xff] %v2475_v13  ;;  %807 = vst [vmem:[#allocation5 + $0x2e8] sm:$0xff] %v2475_v13 }
  0x35   :  { %809 = vst [vmem:[#allocation5 + $0x2f8] sm:$0xff] %v2475_v13  ;;  %810 = vst [vmem:[#allocation5 + $0x300] sm:$0xff] %v2475_v13 }
  0x36   :  { %811 = vst [vmem:[#allocation5 + $0x308] sm:$0xff] %v2475_v13  ;;  %813 = vst [vmem:[#allocation5 + $0x318] sm:$0xff] %v2475_v13 }
  0x37   :  { %814 = vst [vmem:[#allocation5 + $0x320] sm:$0xff] %v2475_v13  ;;  %816 = vst [vmem:[#allocation5 + $0x330] sm:$0xff] %v2475_v13 }
  0x38   :  { %817 = vst [vmem:[#allocation5 + $0x338] sm:$0xff] %v2475_v13  ;;  %819 = vst [vmem:[#allocation5 + $0x348] sm:$0xff] %v2475_v13 }
  0x39   :  { %820 = vst [vmem:[#allocation5 + $0x350] sm:$0xff] %v2475_v13  ;;  %822 = vst [vmem:[#allocation5 + $0x360] sm:$0xff] %v2475_v13 }
  0x3a   :  { %823 = vst [vmem:[#allocation5 + $0x368] sm:$0xff] %v2475_v13  ;;  %825 = vst [vmem:[#allocation5 + $0x378] sm:$0xff] %v2475_v13 }
  0x3b   :  { %826 = vst [vmem:[#allocation5 + $0x380] sm:$0xff] %v2475_v13  ;;  %828 = vst [vmem:[#allocation5 + $0x390] sm:$0xff] %v2475_v13 }
  0x3c   :  { %829 = vst [vmem:[#allocation5 + $0x398] sm:$0xff] %v2475_v13  ;;  %831 = vst [vmem:[#allocation5 + $0x3a8] sm:$0xff] %v2475_v13 }
  0x3d   :  { %832 = vst [vmem:[#allocation5 + $0x3b0] sm:$0xff] %v2475_v13  ;;  %834 = vst [vmem:[#allocation5 + $0x3c0] sm:$0xff] %v2475_v13 }
  0x3e   :  { %835 = vst [vmem:[#allocation5 + $0x3c8] sm:$0xff] %v2475_v13  ;;  %837 = vst [vmem:[#allocation5 + $0x3d8] sm:$0xff] %v2475_v13 }
  0x3f   :  { %838 = vst [vmem:[#allocation5 + $0x3e0] sm:$0xff] %v2475_v13  ;;  %840 = vst [vmem:[#allocation5 + $0x3f0] sm:$0xff] %v2475_v13 }
  0x40   :  { %841 = vst [vmem:[#allocation5 + $0x3f8] sm:$0xff] %v2475_v13  ;;  %843 = vst [vmem:[#allocation5 + $0x408] sm:$0xff] %v2475_v13 }
  0x41   :  { %844 = vst [vmem:[#allocation5 + $0x410] sm:$0xff] %v2475_v13  ;;  %846 = vst [vmem:[#allocation5 + $0x420] sm:$0xff] %v2475_v13 }
  0x42   :  { %847 = vst [vmem:[#allocation5 + $0x428] sm:$0xff] %v2475_v13  ;;  %849 = vst [vmem:[#allocation5 + $0x438] sm:$0xff] %v2475_v13 }
  0x43   :  { %850 = vst [vmem:[#allocation5 + $0x440] sm:$0xff] %v2475_v13  ;;  %852 = vst [vmem:[#allocation5 + $0x450] sm:$0xff] %v2475_v13 }
  0x44   :  { %853 = vst [vmem:[#allocation5 + $0x458] sm:$0xff] %v2475_v13  ;;  %855 = vst [vmem:[#allocation5 + $0x468] sm:$0xff] %v2475_v13 }
  0x45   :  { %856 = vst [vmem:[#allocation5 + $0x470] sm:$0xff] %v2475_v13  ;;  %717 = vst [vmem:[#allocation5 + $0x18] sm:$0xff] %v2485_v16  ;;  %v55_v13 = vadd.s32 192, %v2446_v1  ;;  %v56_v16 = vadd.s32 200, %v2446_v1 }
  0x46   :  { %720 = vst [vmem:[#allocation5 + $0x30] sm:$0xff] %v2489_v17  ;;  %723 = vst [vmem:[#allocation5 + $0x48] sm:$0xff] %v579_v19  ;;  %v2726_v17 = vsel %vm200_vm5, 1.0, %v2420_v6  ;;  %v57_v19 = vadd.s32 208, %v2446_v1 }
  0x47   :  { %726 = vst [vmem:[#allocation5 + $0x60] sm:$0xff] %v582_v21  ;;  %729 = vst [vmem:[#allocation5 + $0x78] sm:$0xff] %v585_v25  ;;  %v634_v21 = vmul.f32 %v2726_v17, %v2467_v11  ;;  %v2737_v25 = vsel %vm206_vm7, 1.0, %v2420_v6  ;;  %vm209_vm8 = vcmp.eq.s32.totalorder %v55_v13, %v2672_v50  ;;  %vm212_vm9 = vcmp.eq.s32.totalorder %v56_v16, %v2672_v50 }
  0x48   :  { %732 = vst [vmem:[#allocation5 + $0x90] sm:$0xff] %v588_v26  ;;  %735 = vst [vmem:[#allocation5 + $0xa8] sm:$0xff] %v591_v34  ;;  %v637_v26 = vmul.f32 %v2734_v24, %v2467_v11  ;;  %v640_v27 = vmul.f32 %v2737_v25, %v2467_v11  ;;  %v2745_v28 = vsel %vm209_vm8, 1.0, %v2420_v6  ;;  %v2751_v30 = vsel %vm212_vm9, 1.0, %v2420_v6 }
  0x49   :  { %738 = vst [vmem:[#allocation5 + $0xc0] sm:$0xff] %v594_v37  ;;  %741 = vst [vmem:[#allocation5 + $0xd8] sm:$0xff] %v597_v38  ;;  %v643_v29 = vmul.f32 %v2745_v28, %v2467_v11  ;;  %vm215_vm10 = vcmp.eq.s32.totalorder %v57_v19, %v2672_v50  ;;  %v646_v33 = vmul.f32 %v2751_v30, %v2467_v11  ;;  %v59_v37 = vadd.s32 224, %v2446_v1 }
  0x4a   :  { %744 = vst [vmem:[#allocation5 + $0xf0] sm:$0xff] %v600_v40  ;;  %747 = vst [vmem:[#allocation5 + $0x108] sm:$0xff] %v603_v42  ;;  %v2758_v34 = vsel %vm215_vm10, 1.0, %v2420_v6  ;;  %v60_v38 = vadd.s32 232, %v2446_v1  ;;  %v61_v42 = vadd.s32 240, %v2446_v1 }
  0x4b   :  { %750 = vst [vmem:[#allocation5 + $0x120] sm:$0xff] %v606_v46  ;;  %753 = vst [vmem:[#allocation5 + $0x138] sm:$0xff] %v609_v47  ;;  %v649_v40 = vmul.f32 %v2758_v34, %v2467_v11  ;;  %v2768_v46 = vsel %vm218_vm11, 1.0, %v2420_v6  ;;  %vm221_vm12 = vcmp.eq.s32.totalorder %v59_v37, %v2672_v50  ;;  %v63_v47 = vadd.s32 256, %v2446_v1 }
  0x4c   :  { %756 = vst [vmem:[#allocation5 + $0x150] sm:$0xff] %v612_v56  ;;  %759 = vst [vmem:[#allocation5 + $0x168] sm:$0xff] %v615_v58  ;;  %vm224_vm13 = vcmp.eq.s32.totalorder %v60_v38, %v2672_v50  ;;  %v652_v48 = vmul.f32 %v2768_v46, %v2467_v11  ;;  %v2776_v49 = vsel %vm221_vm12, 1.0, %v2420_v6  ;;  %vm227_vm14 = vcmp.eq.s32.totalorder %v61_v42, %v2672_v50 }
  0x4d   :  { %763 = vst [vmem:[#allocation5 + $0x188] sm:$0xff] %v619_v61  ;;  %766 = vst [vmem:[#allocation5 + $0x1a0] sm:$0xff] %v622_v62  ;;  %v2779_v51 = vsel %vm224_vm13, 1.0, %v2420_v6  ;;  %v655_v52 = vmul.f32 %v2776_v49, %v2467_v11  ;;  %v2787_v55 = vsel %vm227_vm14, 1.0, %v2420_v6  ;;  %v2793_v58 = vsel %vm230_vm15, 1.0, %v2420_v6 }
  0x4e   :  { %769 = vst [vmem:[#allocation5 + $0x1b8] sm:$0xff] %v625_v0  ;;  %772 = vst [vmem:[#allocation5 + $0x1d0] sm:$0xff] %v628_v5  ;;  %v658_v54 = vmul.f32 %v2779_v51, %v2467_v11  ;;  %v661_v56 = vmul.f32 %v2787_v55, %v2467_v11  ;;  %v2796_v61 = vadd.s32 256, %v2448_v2  ;;  %v64_v62 = vadd.s32 264, %v2446_v1 }
  0x4f   :  { %775 = vst [vmem:[#allocation5 + $0x1e8] sm:$0xff] %v631_v12  ;;  %778 = vst [vmem:[#allocation5 + $0x200] sm:$0xff] %v634_v21  ;;  %v664_v0 = vmul.f32 %v2793_v58, %v2467_v11  ;;  %v66_v50 = vadd.s32 280, %v2446_v1  ;;  %v67_v5 = vadd.s32 288, %v2446_v1  ;;  %v68_v2 = vadd.s32 296, %v2446_v1 }
  0x50   :  { %781 = vst [vmem:[#allocation5 + $0x218] sm:$0xff] %v637_v26  ;;  %784 = vst [vmem:[#allocation5 + $0x230] sm:$0xff] %v640_v27  ;;  %vm234_vm0 = vcmp.eq.s32.totalorder %v63_v47, %v2796_v61  ;;  %vm237_vm1 = vcmp.eq.s32.totalorder %v64_v62, %v2796_v61  ;;  %vm240_vm2 = vcmp.eq.s32.totalorder %v65_v4, %v2796_v61  ;;  %v71_v42 = vadd.s32 320, %v2446_v1 }
  0x51   :  { %787 = vst [vmem:[#allocation5 + $0x248] sm:$0xff] %v643_v29  ;;  %790 = vst [vmem:[#allocation5 + $0x260] sm:$0xff] %v646_v33  ;;  %v2809_v10 = vsel %vm234_vm0, 1.0, %v2420_v6  ;;  %v2812_v12 = vsel %vm237_vm1, 1.0, %v2420_v6  ;;  %vm243_vm3 = vcmp.eq.s32.totalorder %v66_v50, %v2796_v61  ;;  %v2821_v19 = vsel %vm240_vm2, 1.0, %v2420_v6 }
  0x52   :  { %793 = vst [vmem:[#allocation5 + $0x278] sm:$0xff] %v649_v40  ;;  %796 = vst [vmem:[#allocation5 + $0x290] sm:$0xff] %v652_v48  ;;  %v668_v13 = vmul.f32 %v2809_v10, %v2467_v11  ;;  %v671_v16 = vmul.f32 %v2812_v12, %v2467_v11  ;;  %v2824_v21 = vsel %vm243_vm3, 1.0, %v2420_v6  ;;  %v674_v26 = vmul.f32 %v2821_v19, %v2467_v11 }
  0x53   :  { %799 = vst [vmem:[#allocation5 + $0x2a8] sm:$0xff] %v655_v52  ;;  %802 = vst [vmem:[#allocation5 + $0x2c0] sm:$0xff] %v658_v54  ;;  %v677_v27 = vmul.f32 %v2824_v21, %v2467_v11  ;;  %vm246_vm4 = vcmp.eq.s32.totalorder %v67_v5, %v2796_v61  ;;  %vm249_vm5 = vcmp.eq.s32.totalorder %v68_v2, %v2796_v61  ;;  %v70_v33 = vadd.s32 312, %v2446_v1 }
  0x54   :  { %805 = vst [vmem:[#allocation5 + $0x2d8] sm:$0xff] %v661_v56  ;;  %808 = vst [vmem:[#allocation5 + $0x2f0] sm:$0xff] %v664_v0  ;;  %v2835_v29 = vsel %vm246_vm4, 1.0, %v2420_v6  ;;  %v2838_v31 = vsel %vm249_vm5, 1.0, %v2420_v6  ;;  %vm252_vm6 = vcmp.eq.s32.totalorder %v69_v9, %v2796_v61  ;;  %v72_v47 = vadd.s32 328, %v2446_v1 }
  0x55   :  { %812 = vst [vmem:[#allocation5 + $0x310] sm:$0xff] %v668_v13  ;;  %815 = vst [vmem:[#allocation5 + $0x328] sm:$0xff] %v671_v16  ;;  %v680_v37 = vmul.f32 %v2835_v29, %v2467_v11  ;;  %v683_v38 = vmul.f32 %v2838_v31, %v2467_v11  ;;  %v2849_v40 = vsel %vm252_vm6, 1.0, %v2420_v6  ;;  %vm255_vm7 = vcmp.eq.s32.totalorder %v70_v33, %v2796_v61 }
  0x56   :  { %818 = vst [vmem:[#allocation5 + $0x340] sm:$0xff] %v674_v26  ;;  %821 = vst [vmem:[#allocation5 + $0x358] sm:$0xff] %v677_v27  ;;  %v686_v45 = vmul.f32 %v2849_v40, %v2467_v11  ;;  %v73_v48 = vadd.s32 336, %v2446_v1  ;;  %v2858_v52 = vsel %vm255_vm7, 1.0, %v2420_v6  ;;  %vm258_vm8 = vcmp.eq.s32.totalorder %v71_v42, %v2796_v61 }
  0x57   :  { %824 = vst [vmem:[#allocation5 + $0x370] sm:$0xff] %v680_v37  ;;  %827 = vst [vmem:[#allocation5 + $0x388] sm:$0xff] %v683_v38  ;;  %v74_v54 = vadd.s32 344, %v2446_v1  ;;  %v75_v56 = vadd.s32 352, %v2446_v1  ;;  %v689_v62 = vmul.f32 %v2858_v52, %v2467_v11  ;;  %v2866_v0 = vsel %vm258_vm8, 1.0, %v2420_v6 }
  0x58   :  { %830 = vst [vmem:[#allocation5 + $0x3a0] sm:$0xff] %v686_v45  ;;  %vm261_vm9 = vcmp.eq.s32.totalorder %v72_v47, %v2796_v61  ;;  %vm264_vm10 = vcmp.eq.s32.totalorder %v73_v48, %v2796_v61  ;;  %v692_v4 = vmul.f32 %v2866_v0, %v2467_v11  ;;  %v76_v27 = vadd.s32 360, %v2446_v1 }
  0x59   :  { %v2873_v50 = vsel %vm261_vm9, 1.0, %v2420_v6  ;;  %v2876_v5 = vsel %vm264_vm10, 1.0, %v2420_v6  ;;  %vm267_vm11 = vcmp.eq.s32.totalorder %v74_v54, %v2796_v61  ;;  %833 = vst [vmem:[#allocation5 + $0x3b8] sm:$0xff] %v689_v62  ;;  %vm270_vm12 = vcmp.eq.s32.totalorder %v75_v56, %v2796_v61 }
  0x5a   :  { %v695_v2 = vmul.f32 %v2873_v50, %v2467_v11  ;;  %v698_v9 = vmul.f32 %v2876_v5, %v2467_v11  ;;  %v2884_v13 = vsel %vm267_vm11, 1.0, %v2420_v6  ;;  %836 = vst [vmem:[#allocation5 + $0x3d0] sm:$0xff] %v692_v4  ;;  %v2890_v26 = vsel %vm270_vm12, 1.0, %v2420_v6 }
  0x5b   :  { %v701_v16 = vmul.f32 %v2884_v13, %v2467_v11  ;;  %v77_v33 = vadd.s32 368, %v2446_v1  ;;  %v704_v37 = vmul.f32 %v2890_v26, %v2467_v11  ;;  %v78_v38 = vadd.s32 376, %v2446_v1 }
  0x5c   :  { %839 = vst [vmem:[#allocation5 + $0x3e8] sm:$0xff] %v695_v2  ;;  %842 = vst [vmem:[#allocation5 + $0x400] sm:$0xff] %v698_v9  ;;  %v2898_v42 = vstv %s2832_s0  ;;  %v2901_v45 = vstv %s2842_s17  ;;  %vm273_vm13 = vcmp.eq.s32.totalorder %v76_v27, %v2796_v61 }
  0x5d   :  { %845 = vst [vmem:[#allocation5 + $0x418] sm:$0xff] %v701_v16  ;;  %vm276_vm14 = vcmp.eq.s32.totalorder %v77_v33, %v2796_v61  ;;  %v860_v47 = vmul.f32 %v2456_v7, %v2898_v42  ;;  %v2908_v48 = vmul.f32 0.0, %v2898_v42  ;;  %848 = vst [vmem:[#allocation5 + $0x430] sm:$0xff] %v704_v37  ;;  %v2911_v54 = vsel %vm273_vm13, 1.0, %v2420_v6 }
  0x5e   :  { %v2914_v1 = vsel %vm276_vm14, 1.0, %v2420_v6  ;;  %vm279_vm15 = vcmp.eq.s32.totalorder %v78_v38, %v2796_v61  ;;  %v2919_v56 = vmul.f32 %v2478_v14, %v2898_v42  ;;  %v2923_v62 = vmul.f32 %v2911_v54, %v2467_v11 }
  0x5f   :  { %v2927_v4 = vmul.f32 %v2914_v1, %v2467_v11  ;;  %v2930_v2 = vsel %vm279_vm15, 1.0, %v2420_v6  ;;  %1005 = vst [vmem:[#allocation5 + $0x480] sm:$0xff] %v860_v47  ;;  %1006 = vst [vmem:[#allocation5 + $0x488] sm:$0xff] %v2908_v48  ;;  %v866_v6 = vmul.f32 %v2481_v15, %v2898_v42  ;;  %v869_v9 = vmul.f32 %v2492_v18, %v2898_v42 }
  0x60   :  { %1007 = vst [vmem:[#allocation5 + $0x490] sm:$0xff] %v2908_v48  ;;  %1009 = vst [vmem:[#allocation5 + $0x4a0] sm:$0xff] %v2908_v48  ;;  %v713_v61 = vmul.f32 %v2930_v2, %v2467_v11  ;;  %v872_v16 = vmul.f32 %v2598_v20, %v2898_v42  ;;  %v875_v27 = vmul.f32 %v2609_v22, %v2898_v42 }
  0x61   :  { %1010 = vst [vmem:[#allocation5 + $0x4a8] sm:$0xff] %v2908_v48  ;;  %1012 = vst [vmem:[#allocation5 + $0x4b8] sm:$0xff] %v2908_v48  ;;  %v878_v33 = vmul.f32 %v2612_v23, %v2898_v42  ;;  %v881_v11 = vmul.f32 %v2626_v32, %v2898_v42  ;;  %v884_v37 = vmul.f32 %v2634_v35, %v2898_v42 }
  0x62   :  { %1013 = vst [vmem:[#allocation5 + $0x4c0] sm:$0xff] %v2908_v48  ;;  %1015 = vst [vmem:[#allocation5 + $0x4d0] sm:$0xff] %v2908_v48  ;;  %v887_v38 = vmul.f32 %v2637_v36, %v2898_v42  ;;  %v890_v47 = vmul.f32 %v2645_v39, %v2898_v42 }
  0x63   :  { %1016 = vst [vmem:[#allocation5 + $0x4d8] sm:$0xff] %v2908_v48  ;;  %1018 = vst [vmem:[#allocation5 + $0x4e8] sm:$0xff] %v2908_v48 }
  0x64   :  { %1019 = vst [vmem:[#allocation5 + $0x4f0] sm:$0xff] %v2908_v48  ;;  %1021 = vst [vmem:[#allocation5 + $0x500] sm:$0xff] %v2908_v48 }
  0x65   :  { %1022 = vst [vmem:[#allocation5 + $0x508] sm:$0xff] %v2908_v48  ;;  %1024 = vst [vmem:[#allocation5 + $0x518] sm:$0xff] %v2908_v48 }
  0x66   :  { %1025 = vst [vmem:[#allocation5 + $0x520] sm:$0xff] %v2908_v48  ;;  %1027 = vst [vmem:[#allocation5 + $0x530] sm:$0xff] %v2908_v48 }
  0x67   :  { %1028 = vst [vmem:[#allocation5 + $0x538] sm:$0xff] %v2908_v48  ;;  %1030 = vst [vmem:[#allocation5 + $0x548] sm:$0xff] %v2908_v48 }
  0x68   :  { %1031 = vst [vmem:[#allocation5 + $0x550] sm:$0xff] %v2908_v48  ;;  %1033 = vst [vmem:[#allocation5 + $0x560] sm:$0xff] %v2908_v48 }
  0x69   :  { %1034 = vst [vmem:[#allocation5 + $0x568] sm:$0xff] %v2908_v48  ;;  %1036 = vst [vmem:[#allocation5 + $0x578] sm:$0xff] %v2908_v48 }
  0x6a   :  { %1037 = vst [vmem:[#allocation5 + $0x580] sm:$0xff] %v2908_v48  ;;  %1039 = vst [vmem:[#allocation5 + $0x590] sm:$0xff] %v2908_v48 }
  0x6b   :  { %1040 = vst [vmem:[#allocation5 + $0x598] sm:$0xff] %v2908_v48  ;;  %1042 = vst [vmem:[#allocation5 + $0x5a8] sm:$0xff] %v2908_v48 }
  0x6c   :  { %1043 = vst [vmem:[#allocation5 + $0x5b0] sm:$0xff] %v2908_v48  ;;  %1045 = vst [vmem:[#allocation5 + $0x5c0] sm:$0xff] %v2908_v48 }
  0x6d   :  { %1046 = vst [vmem:[#allocation5 + $0x5c8] sm:$0xff] %v2908_v48  ;;  %1048 = vst [vmem:[#allocation5 + $0x5d8] sm:$0xff] %v2908_v48 }
  0x6e   :  { %1049 = vst [vmem:[#allocation5 + $0x5e0] sm:$0xff] %v2908_v48  ;;  %1051 = vst [vmem:[#allocation5 + $0x5f0] sm:$0xff] %v2908_v48 }
  0x6f   :  { %1052 = vst [vmem:[#allocation5 + $0x5f8] sm:$0xff] %v2908_v48  ;;  %1053 = vst [vmem:[#allocation5 + $0x600] sm:$0xff] %v2908_v48 }
  0x70   :  { %1055 = vst [vmem:[#allocation5 + $0x610] sm:$0xff] %v2908_v48  ;;  %1056 = vst [vmem:[#allocation5 + $0x618] sm:$0xff] %v2908_v48 }
  0x71   :  { %1058 = vst [vmem:[#allocation5 + $0x628] sm:$0xff] %v2908_v48  ;;  %1059 = vst [vmem:[#allocation5 + $0x630] sm:$0xff] %v2908_v48 }
  0x72   :  { %1061 = vst [vmem:[#allocation5 + $0x640] sm:$0xff] %v2908_v48  ;;  %1062 = vst [vmem:[#allocation5 + $0x648] sm:$0xff] %v2908_v48 }
  0x73   :  { %1064 = vst [vmem:[#allocation5 + $0x658] sm:$0xff] %v2908_v48  ;;  %1065 = vst [vmem:[#allocation5 + $0x660] sm:$0xff] %v2908_v48 }
  0x74   :  { %1067 = vst [vmem:[#allocation5 + $0x670] sm:$0xff] %v2908_v48  ;;  %1068 = vst [vmem:[#allocation5 + $0x678] sm:$0xff] %v2908_v48 }
  0x75   :  { %1070 = vst [vmem:[#allocation5 + $0x688] sm:$0xff] %v2908_v48  ;;  %1071 = vst [vmem:[#allocation5 + $0x690] sm:$0xff] %v2908_v48 }
  0x76   :  { %1073 = vst [vmem:[#allocation5 + $0x6a0] sm:$0xff] %v2908_v48  ;;  %1074 = vst [vmem:[#allocation5 + $0x6a8] sm:$0xff] %v2908_v48 }
  0x77   :  { %1076 = vst [vmem:[#allocation5 + $0x6b8] sm:$0xff] %v2908_v48  ;;  %1077 = vst [vmem:[#allocation5 + $0x6c0] sm:$0xff] %v2908_v48 }
  0x78   :  { %1079 = vst [vmem:[#allocation5 + $0x6d0] sm:$0xff] %v2908_v48  ;;  %1080 = vst [vmem:[#allocation5 + $0x6d8] sm:$0xff] %v2908_v48 }
  0x79   :  { %1082 = vst [vmem:[#allocation5 + $0x6e8] sm:$0xff] %v2908_v48  ;;  %1083 = vst [vmem:[#allocation5 + $0x6f0] sm:$0xff] %v2908_v48 }
  0x7a   :  { %1085 = vst [vmem:[#allocation5 + $0x700] sm:$0xff] %v2908_v48  ;;  %1086 = vst [vmem:[#allocation5 + $0x708] sm:$0xff] %v2908_v48 }
  0x7b   :  { %1088 = vst [vmem:[#allocation5 + $0x718] sm:$0xff] %v2908_v48  ;;  %1089 = vst [vmem:[#allocation5 + $0x720] sm:$0xff] %v2908_v48 }
  0x7c   :  { %1091 = vst [vmem:[#allocation5 + $0x730] sm:$0xff] %v2908_v48  ;;  %1092 = vst [vmem:[#allocation5 + $0x738] sm:$0xff] %v2908_v48 }
  0x7d   :  { %1094 = vst [vmem:[#allocation5 + $0x748] sm:$0xff] %v2908_v48  ;;  %1095 = vst [vmem:[#allocation5 + $0x750] sm:$0xff] %v2908_v48 }
  0x7e   :  { %1097 = vst [vmem:[#allocation5 + $0x760] sm:$0xff] %v2908_v48  ;;  %1098 = vst [vmem:[#allocation5 + $0x768] sm:$0xff] %v2908_v48 }
  0x7f   :  { %1100 = vst [vmem:[#allocation5 + $0x778] sm:$0xff] %v2908_v48  ;;  %1101 = vst [vmem:[#allocation5 + $0x780] sm:$0xff] %v2908_v48 }
  0x80   :  { %1102 = vst [vmem:[#allocation5 + $0x788] sm:$0xff] %v2908_v48  ;;  %1104 = vst [vmem:[#allocation5 + $0x798] sm:$0xff] %v2908_v48 }
  0x81   :  { %1105 = vst [vmem:[#allocation5 + $0x7a0] sm:$0xff] %v2908_v48  ;;  %1107 = vst [vmem:[#allocation5 + $0x7b0] sm:$0xff] %v2908_v48 }
  0x82   :  { %1108 = vst [vmem:[#allocation5 + $0x7b8] sm:$0xff] %v2908_v48  ;;  %1110 = vst [vmem:[#allocation5 + $0x7c8] sm:$0xff] %v2908_v48 }
  0x83   :  { %1111 = vst [vmem:[#allocation5 + $0x7d0] sm:$0xff] %v2908_v48  ;;  %1113 = vst [vmem:[#allocation5 + $0x7e0] sm:$0xff] %v2908_v48 }
  0x84   :  { %1114 = vst [vmem:[#allocation5 + $0x7e8] sm:$0xff] %v2908_v48  ;;  %1116 = vst [vmem:[#allocation5 + $0x7f8] sm:$0xff] %v2908_v48 }
  0x85   :  { %1117 = vst [vmem:[#allocation5 + $0x800] sm:$0xff] %v2908_v48  ;;  %1119 = vst [vmem:[#allocation5 + $0x810] sm:$0xff] %v2908_v48 }
  0x86   :  { %1120 = vst [vmem:[#allocation5 + $0x818] sm:$0xff] %v2908_v48  ;;  %1122 = vst [vmem:[#allocation5 + $0x828] sm:$0xff] %v2908_v48 }
  0x87   :  { %1123 = vst [vmem:[#allocation5 + $0x830] sm:$0xff] %v2908_v48  ;;  %1125 = vst [vmem:[#allocation5 + $0x840] sm:$0xff] %v2908_v48 }
  0x88   :  { %1126 = vst [vmem:[#allocation5 + $0x848] sm:$0xff] %v2908_v48  ;;  %1128 = vst [vmem:[#allocation5 + $0x858] sm:$0xff] %v2908_v48 }
  0x89   :  { %1129 = vst [vmem:[#allocation5 + $0x860] sm:$0xff] %v2908_v48  ;;  %1131 = vst [vmem:[#allocation5 + $0x870] sm:$0xff] %v2908_v48 }
  0x8a   :  { %1132 = vst [vmem:[#allocation5 + $0x878] sm:$0xff] %v2908_v48  ;;  %1134 = vst [vmem:[#allocation5 + $0x888] sm:$0xff] %v2908_v48 }
  0x8b   :  { %1135 = vst [vmem:[#allocation5 + $0x890] sm:$0xff] %v2908_v48  ;;  %1137 = vst [vmem:[#allocation5 + $0x8a0] sm:$0xff] %v2908_v48 }
  0x8c   :  { %1138 = vst [vmem:[#allocation5 + $0x8a8] sm:$0xff] %v2908_v48  ;;  %1140 = vst [vmem:[#allocation5 + $0x8b8] sm:$0xff] %v2908_v48 }
  0x8d   :  { %1141 = vst [vmem:[#allocation5 + $0x8c0] sm:$0xff] %v2908_v48  ;;  %1143 = vst [vmem:[#allocation5 + $0x8d0] sm:$0xff] %v2908_v48 }
  0x8e   :  { %1144 = vst [vmem:[#allocation5 + $0x8d8] sm:$0xff] %v2908_v48  ;;  %1146 = vst [vmem:[#allocation5 + $0x8e8] sm:$0xff] %v2908_v48 }
  0x8f   :  { %1147 = vst [vmem:[#allocation5 + $0x8f0] sm:$0xff] %v2908_v48  ;;  %1008 = vst [vmem:[#allocation5 + $0x498] sm:$0xff] %v2919_v56  ;;  %v893_v48 = vmul.f32 %v2651_v41, %v2898_v42  ;;  %v896_v56 = vmul.f32 %v2658_v43, %v2898_v42 }
  0x90   :  { %851 = vst [vmem:[#allocation5 + $0x448] sm:$0xff] %v2923_v62  ;;  %854 = vst [vmem:[#allocation5 + $0x460] sm:$0xff] %v2927_v4  ;;  %v899_v62 = vmul.f32 %v2661_v44, %v2898_v42  ;;  %v902_v4 = vmul.f32 %v2677_v53, %v2898_v42 }
  0x91   :  { %1011 = vst [vmem:[#allocation5 + $0x4b0] sm:$0xff] %v866_v6  ;;  %857 = vst [vmem:[#allocation5 + $0x478] sm:$0xff] %v713_v61  ;;  %v905_v6 = vmul.f32 %v2685_v57, %v2898_v42  ;;  %v909_v61 = vmul.f32 %v2692_v59, %v2898_v42 }
  0x92   :  { %1014 = vst [vmem:[#allocation5 + $0x4c8] sm:$0xff] %v869_v9  ;;  %1017 = vst [vmem:[#allocation5 + $0x4e0] sm:$0xff] %v872_v16  ;;  %v912_v9 = vmul.f32 %v2695_v60, %v2898_v42  ;;  %v915_v16 = vmul.f32 %v2703_v63, %v2898_v42 }
  0x93   :  { %1020 = vst [vmem:[#allocation5 + $0x4f8] sm:$0xff] %v875_v27  ;;  %1023 = vst [vmem:[#allocation5 + $0x510] sm:$0xff] %v878_v33  ;;  %v918_v27 = vmul.f32 %v2709_v3, %v2898_v42  ;;  %v921_v33 = vmul.f32 %v2716_v8, %v2898_v42 }
  0x94   :  { %1026 = vst [vmem:[#allocation5 + $0x528] sm:$0xff] %v881_v11  ;;  %1029 = vst [vmem:[#allocation5 + $0x540] sm:$0xff] %v884_v37  ;;  %v924_v11 = vmul.f32 %v2726_v17, %v2898_v42  ;;  %v927_v37 = vmul.f32 %v2734_v24, %v2898_v42 }
  0x95   :  { %1032 = vst [vmem:[#allocation5 + $0x558] sm:$0xff] %v887_v38  ;;  %1035 = vst [vmem:[#allocation5 + $0x570] sm:$0xff] %v890_v47  ;;  %v930_v38 = vmul.f32 %v2737_v25, %v2898_v42  ;;  %v933_v47 = vmul.f32 %v2745_v28, %v2898_v42 }
  0x96   :  { %1038 = vst [vmem:[#allocation5 + $0x588] sm:$0xff] %v893_v48  ;;  %1041 = vst [vmem:[#allocation5 + $0x5a0] sm:$0xff] %v896_v56  ;;  %v936_v48 = vmul.f32 %v2751_v30, %v2898_v42  ;;  %v939_v56 = vmul.f32 %v2758_v34, %v2898_v42 }
  0x97   :  { %1044 = vst [vmem:[#allocation5 + $0x5b8] sm:$0xff] %v899_v62  ;;  %1047 = vst [vmem:[#allocation5 + $0x5d0] sm:$0xff] %v902_v4  ;;  %v942_v62 = vmul.f32 %v2768_v46, %v2898_v42  ;;  %v945_v4 = vmul.f32 %v2776_v49, %v2898_v42 }
  0x98   :  { %1050 = vst [vmem:[#allocation5 + $0x5e8] sm:$0xff] %v905_v6  ;;  %1054 = vst [vmem:[#allocation5 + $0x608] sm:$0xff] %v909_v61  ;;  %v948_v6 = vmul.f32 %v2779_v51, %v2898_v42  ;;  %v951_v61 = vmul.f32 %v2787_v55, %v2898_v42 }
  0x99   :  { %1057 = vst [vmem:[#allocation5 + $0x620] sm:$0xff] %v912_v9  ;;  %1060 = vst [vmem:[#allocation5 + $0x638] sm:$0xff] %v915_v16  ;;  %v954_v9 = vmul.f32 %v2793_v58, %v2898_v42  ;;  %v958_v16 = vmul.f32 %v2809_v10, %v2898_v42 }
  0x9a   :  { %1063 = vst [vmem:[#allocation5 + $0x650] sm:$0xff] %v918_v27  ;;  %1066 = vst [vmem:[#allocation5 + $0x668] sm:$0xff] %v921_v33  ;;  %v961_v27 = vmul.f32 %v2812_v12, %v2898_v42  ;;  %v964_v33 = vmul.f32 %v2821_v19, %v2898_v42 }
  0x9b   :  { %1069 = vst [vmem:[#allocation5 + $0x680] sm:$0xff] %v924_v11  ;;  %1072 = vst [vmem:[#allocation5 + $0x698] sm:$0xff] %v927_v37  ;;  %v967_v11 = vmul.f32 %v2824_v21, %v2898_v42  ;;  %v970_v37 = vmul.f32 %v2835_v29, %v2898_v42 }
  0x9c   :  { %1075 = vst [vmem:[#allocation5 + $0x6b0] sm:$0xff] %v930_v38  ;;  %1078 = vst [vmem:[#allocation5 + $0x6c8] sm:$0xff] %v933_v47  ;;  %v973_v38 = vmul.f32 %v2838_v31, %v2898_v42  ;;  %v976_v47 = vmul.f32 %v2849_v40, %v2898_v42 }
  0x9d   :  { %1081 = vst [vmem:[#allocation5 + $0x6e0] sm:$0xff] %v936_v48  ;;  %1084 = vst [vmem:[#allocation5 + $0x6f8] sm:$0xff] %v939_v56  ;;  %v979_v48 = vmul.f32 %v2858_v52, %v2898_v42  ;;  %v982_v56 = vmul.f32 %v2866_v0, %v2898_v42 }
  0x9e   :  { %1087 = vst [vmem:[#allocation5 + $0x710] sm:$0xff] %v942_v62  ;;  %1090 = vst [vmem:[#allocation5 + $0x728] sm:$0xff] %v945_v4  ;;  %v985_v62 = vmul.f32 %v2873_v50, %v2898_v42  ;;  %v988_v4 = vmul.f32 %v2876_v5, %v2898_v42 }
  0x9f   :  { %1093 = vst [vmem:[#allocation5 + $0x740] sm:$0xff] %v948_v6  ;;  %1096 = vst [vmem:[#allocation5 + $0x758] sm:$0xff] %v951_v61  ;;  %v991_v6 = vmul.f32 %v2884_v13, %v2898_v42  ;;  %v994_v61 = vmul.f32 %v2890_v26, %v2898_v42 }
  0xa0   :  { %1099 = vst [vmem:[#allocation5 + $0x770] sm:$0xff] %v954_v9  ;;  %1103 = vst [vmem:[#allocation5 + $0x790] sm:$0xff] %v958_v16  ;;  %v997_v9 = vmul.f32 %v2911_v54, %v2898_v42  ;;  %v1000_v16 = vmul.f32 %v2914_v1, %v2898_v42 }
  0xa1   :  { %1106 = vst [vmem:[#allocation5 + $0x7a8] sm:$0xff] %v961_v27  ;;  %1109 = vst [vmem:[#allocation5 + $0x7c0] sm:$0xff] %v964_v33  ;;  %v1003_v27 = vmul.f32 %v2930_v2, %v2898_v42  ;;  %v1151_v33 = vmul.f32 %v2456_v7, %v2901_v45  ;;  %v3140_v42 = vmul.f32 %v2492_v18, %v2901_v45 }
  0xa2   :  { %1112 = vst [vmem:[#allocation5 + $0x7d8] sm:$0xff] %v967_v11  ;;  %1115 = vst [vmem:[#allocation5 + $0x7f0] sm:$0xff] %v970_v37  ;;  %v3128_v11 = vmul.f32 0.0, %v2901_v45  ;;  %v3132_v37 = vmul.f32 %v2478_v14, %v2901_v45 }
  0xa3   :  { %1118 = vst [vmem:[#allocation5 + $0x808] sm:$0xff] %v973_v38  ;;  %1121 = vst [vmem:[#allocation5 + $0x820] sm:$0xff] %v976_v47  ;;  %v3136_v38 = vmul.f32 %v2481_v15, %v2901_v45  ;;  %v3144_v47 = vmul.f32 %v2598_v20, %v2901_v45 }
  0xa4   :  { %1124 = vst [vmem:[#allocation5 + $0x838] sm:$0xff] %v979_v48  ;;  %1127 = vst [vmem:[#allocation5 + $0x850] sm:$0xff] %v982_v56  ;;  %v1166_v48 = vmul.f32 %v2609_v22, %v2901_v45  ;;  %v1169_v56 = vmul.f32 %v2612_v23, %v2901_v45 }
  0xa5   :  { %1130 = vst [vmem:[#allocation5 + $0x868] sm:$0xff] %v985_v62  ;;  %1133 = vst [vmem:[#allocation5 + $0x880] sm:$0xff] %v988_v4  ;;  %v1172_v62 = vmul.f32 %v2626_v32, %v2901_v45  ;;  %v1175_v4 = vmul.f32 %v2634_v35, %v2901_v45 }
  0xa6   :  { %1136 = vst [vmem:[#allocation5 + $0x898] sm:$0xff] %v991_v6  ;;  %1139 = vst [vmem:[#allocation5 + $0x8b0] sm:$0xff] %v994_v61  ;;  %v1178_v6 = vmul.f32 %v2637_v36, %v2901_v45  ;;  %v1181_v61 = vmul.f32 %v2645_v39, %v2901_v45 }
  0xa7   :  { %1142 = vst [vmem:[#allocation5 + $0x8c8] sm:$0xff] %v997_v9  ;;  %1145 = vst [vmem:[#allocation5 + $0x8e0] sm:$0xff] %v1000_v16  ;;  %v1184_v9 = vmul.f32 %v2651_v41, %v2901_v45  ;;  %v1187_v16 = vmul.f32 %v2658_v43, %v2901_v45 }
  0xa8   :  { %1148 = vst [vmem:[#allocation5 + $0x8f8] sm:$0xff] %v1003_v27  ;;  %1296 = vst [vmem:[#allocation5 + $0x900] sm:$0xff] %v1151_v33  ;;  %v1190_v27 = vmul.f32 %v2661_v44, %v2901_v45  ;;  %v1193_v33 = vmul.f32 %v2677_v53, %v2901_v45 }
  0xa9   :  { %1297 = vst [vmem:[#allocation5 + $0x908] sm:$0xff] %v3128_v11  ;;  %1298 = vst [vmem:[#allocation5 + $0x910] sm:$0xff] %v3128_v11 }
  0xaa   :  { %1300 = vst [vmem:[#allocation5 + $0x920] sm:$0xff] %v3128_v11  ;;  %1301 = vst [vmem:[#allocation5 + $0x928] sm:$0xff] %v3128_v11 }
  0xab   :  { %1303 = vst [vmem:[#allocation5 + $0x938] sm:$0xff] %v3128_v11  ;;  %1304 = vst [vmem:[#allocation5 + $0x940] sm:$0xff] %v3128_v11 }
  0xac   :  { %1306 = vst [vmem:[#allocation5 + $0x950] sm:$0xff] %v3128_v11  ;;  %1307 = vst [vmem:[#allocation5 + $0x958] sm:$0xff] %v3128_v11 }
  0xad   :  { %1309 = vst [vmem:[#allocation5 + $0x968] sm:$0xff] %v3128_v11  ;;  %1310 = vst [vmem:[#allocation5 + $0x970] sm:$0xff] %v3128_v11 }
  0xae   :  { %1312 = vst [vmem:[#allocation5 + $0x980] sm:$0xff] %v3128_v11  ;;  %1313 = vst [vmem:[#allocation5 + $0x988] sm:$0xff] %v3128_v11 }
  0xaf   :  { %1315 = vst [vmem:[#allocation5 + $0x998] sm:$0xff] %v3128_v11  ;;  %1316 = vst [vmem:[#allocation5 + $0x9a0] sm:$0xff] %v3128_v11 }
  0xb0   :  { %1318 = vst [vmem:[#allocation5 + $0x9b0] sm:$0xff] %v3128_v11  ;;  %1319 = vst [vmem:[#allocation5 + $0x9b8] sm:$0xff] %v3128_v11 }
  0xb1   :  { %1321 = vst [vmem:[#allocation5 + $0x9c8] sm:$0xff] %v3128_v11  ;;  %1322 = vst [vmem:[#allocation5 + $0x9d0] sm:$0xff] %v3128_v11 }
  0xb2   :  { %1324 = vst [vmem:[#allocation5 + $0x9e0] sm:$0xff] %v3128_v11  ;;  %1325 = vst [vmem:[#allocation5 + $0x9e8] sm:$0xff] %v3128_v11 }
  0xb3   :  { %1327 = vst [vmem:[#allocation5 + $0x9f8] sm:$0xff] %v3128_v11  ;;  %1328 = vst [vmem:[#allocation5 + $0xa00] sm:$0xff] %v3128_v11 }
  0xb4   :  { %1330 = vst [vmem:[#allocation5 + $0xa10] sm:$0xff] %v3128_v11  ;;  %1331 = vst [vmem:[#allocation5 + $0xa18] sm:$0xff] %v3128_v11 }
  0xb5   :  { %1333 = vst [vmem:[#allocation5 + $0xa28] sm:$0xff] %v3128_v11  ;;  %1334 = vst [vmem:[#allocation5 + $0xa30] sm:$0xff] %v3128_v11 }
  0xb6   :  { %1336 = vst [vmem:[#allocation5 + $0xa40] sm:$0xff] %v3128_v11  ;;  %1337 = vst [vmem:[#allocation5 + $0xa48] sm:$0xff] %v3128_v11 }
  0xb7   :  { %1339 = vst [vmem:[#allocation5 + $0xa58] sm:$0xff] %v3128_v11  ;;  %1340 = vst [vmem:[#allocation5 + $0xa60] sm:$0xff] %v3128_v11 }
  0xb8   :  { %1342 = vst [vmem:[#allocation5 + $0xa70] sm:$0xff] %v3128_v11  ;;  %1343 = vst [vmem:[#allocation5 + $0xa78] sm:$0xff] %v3128_v11 }
  0xb9   :  { %1344 = vst [vmem:[#allocation5 + $0xa80] sm:$0xff] %v3128_v11  ;;  %1346 = vst [vmem:[#allocation5 + $0xa90] sm:$0xff] %v3128_v11 }
  0xba   :  { %1347 = vst [vmem:[#allocation5 + $0xa98] sm:$0xff] %v3128_v11  ;;  %1349 = vst [vmem:[#allocation5 + $0xaa8] sm:$0xff] %v3128_v11 }
  0xbb   :  { %1350 = vst [vmem:[#allocation5 + $0xab0] sm:$0xff] %v3128_v11  ;;  %1352 = vst [vmem:[#allocation5 + $0xac0] sm:$0xff] %v3128_v11 }
  0xbc   :  { %1353 = vst [vmem:[#allocation5 + $0xac8] sm:$0xff] %v3128_v11  ;;  %1355 = vst [vmem:[#allocation5 + $0xad8] sm:$0xff] %v3128_v11 }
  0xbd   :  { %1356 = vst [vmem:[#allocation5 + $0xae0] sm:$0xff] %v3128_v11  ;;  %1358 = vst [vmem:[#allocation5 + $0xaf0] sm:$0xff] %v3128_v11 }
  0xbe   :  { %1359 = vst [vmem:[#allocation5 + $0xaf8] sm:$0xff] %v3128_v11  ;;  %1361 = vst [vmem:[#allocation5 + $0xb08] sm:$0xff] %v3128_v11 }
  0xbf   :  { %1362 = vst [vmem:[#allocation5 + $0xb10] sm:$0xff] %v3128_v11  ;;  %1364 = vst [vmem:[#allocation5 + $0xb20] sm:$0xff] %v3128_v11 }
  0xc0   :  { %1365 = vst [vmem:[#allocation5 + $0xb28] sm:$0xff] %v3128_v11  ;;  %1367 = vst [vmem:[#allocation5 + $0xb38] sm:$0xff] %v3128_v11 }
  0xc1   :  { %1368 = vst [vmem:[#allocation5 + $0xb40] sm:$0xff] %v3128_v11  ;;  %1370 = vst [vmem:[#allocation5 + $0xb50] sm:$0xff] %v3128_v11 }
  0xc2   :  { %1371 = vst [vmem:[#allocation5 + $0xb58] sm:$0xff] %v3128_v11  ;;  %1373 = vst [vmem:[#allocation5 + $0xb68] sm:$0xff] %v3128_v11 }
  0xc3   :  { %1374 = vst [vmem:[#allocation5 + $0xb70] sm:$0xff] %v3128_v11  ;;  %1376 = vst [vmem:[#allocation5 + $0xb80] sm:$0xff] %v3128_v11 }
  0xc4   :  { %1377 = vst [vmem:[#allocation5 + $0xb88] sm:$0xff] %v3128_v11  ;;  %1379 = vst [vmem:[#allocation5 + $0xb98] sm:$0xff] %v3128_v11 }
  0xc5   :  { %1380 = vst [vmem:[#allocation5 + $0xba0] sm:$0xff] %v3128_v11  ;;  %1382 = vst [vmem:[#allocation5 + $0xbb0] sm:$0xff] %v3128_v11 }
  0xc6   :  { %1383 = vst [vmem:[#allocation5 + $0xbb8] sm:$0xff] %v3128_v11  ;;  %1385 = vst [vmem:[#allocation5 + $0xbc8] sm:$0xff] %v3128_v11 }
  0xc7   :  { %1386 = vst [vmem:[#allocation5 + $0xbd0] sm:$0xff] %v3128_v11  ;;  %1388 = vst [vmem:[#allocation5 + $0xbe0] sm:$0xff] %v3128_v11 }
  0xc8   :  { %1389 = vst [vmem:[#allocation5 + $0xbe8] sm:$0xff] %v3128_v11  ;;  %1391 = vst [vmem:[#allocation5 + $0xbf8] sm:$0xff] %v3128_v11 }
  0xc9   :  { %1392 = vst [vmem:[#allocation5 + $0xc00] sm:$0xff] %v3128_v11  ;;  %1393 = vst [vmem:[#allocation5 + $0xc08] sm:$0xff] %v3128_v11 }
  0xca   :  { %1395 = vst [vmem:[#allocation5 + $0xc18] sm:$0xff] %v3128_v11  ;;  %1396 = vst [vmem:[#allocation5 + $0xc20] sm:$0xff] %v3128_v11 }
  0xcb   :  { %1398 = vst [vmem:[#allocation5 + $0xc30] sm:$0xff] %v3128_v11  ;;  %1399 = vst [vmem:[#allocation5 + $0xc38] sm:$0xff] %v3128_v11 }
  0xcc   :  { %1401 = vst [vmem:[#allocation5 + $0xc48] sm:$0xff] %v3128_v11  ;;  %1402 = vst [vmem:[#allocation5 + $0xc50] sm:$0xff] %v3128_v11 }
  0xcd   :  { %1404 = vst [vmem:[#allocation5 + $0xc60] sm:$0xff] %v3128_v11  ;;  %1405 = vst [vmem:[#allocation5 + $0xc68] sm:$0xff] %v3128_v11 }
  0xce   :  { %1407 = vst [vmem:[#allocation5 + $0xc78] sm:$0xff] %v3128_v11  ;;  %1408 = vst [vmem:[#allocation5 + $0xc80] sm:$0xff] %v3128_v11 }
  0xcf   :  { %1410 = vst [vmem:[#allocation5 + $0xc90] sm:$0xff] %v3128_v11  ;;  %1411 = vst [vmem:[#allocation5 + $0xc98] sm:$0xff] %v3128_v11 }
  0xd0   :  { %1413 = vst [vmem:[#allocation5 + $0xca8] sm:$0xff] %v3128_v11  ;;  %1414 = vst [vmem:[#allocation5 + $0xcb0] sm:$0xff] %v3128_v11 }
  0xd1   :  { %1416 = vst [vmem:[#allocation5 + $0xcc0] sm:$0xff] %v3128_v11  ;;  %1417 = vst [vmem:[#allocation5 + $0xcc8] sm:$0xff] %v3128_v11 }
  0xd2   :  { %1419 = vst [vmem:[#allocation5 + $0xcd8] sm:$0xff] %v3128_v11  ;;  %1420 = vst [vmem:[#allocation5 + $0xce0] sm:$0xff] %v3128_v11 }
  0xd3   :  { %1422 = vst [vmem:[#allocation5 + $0xcf0] sm:$0xff] %v3128_v11  ;;  %1423 = vst [vmem:[#allocation5 + $0xcf8] sm:$0xff] %v3128_v11 }
  0xd4   :  { %1425 = vst [vmem:[#allocation5 + $0xd08] sm:$0xff] %v3128_v11  ;;  %1426 = vst [vmem:[#allocation5 + $0xd10] sm:$0xff] %v3128_v11 }
  0xd5   :  { %1428 = vst [vmem:[#allocation5 + $0xd20] sm:$0xff] %v3128_v11  ;;  %1429 = vst [vmem:[#allocation5 + $0xd28] sm:$0xff] %v3128_v11 }
  0xd6   :  { %1431 = vst [vmem:[#allocation5 + $0xd38] sm:$0xff] %v3128_v11  ;;  %1432 = vst [vmem:[#allocation5 + $0xd40] sm:$0xff] %v3128_v11 }
  0xd7   :  { %1434 = vst [vmem:[#allocation5 + $0xd50] sm:$0xff] %v3128_v11  ;;  %1435 = vst [vmem:[#allocation5 + $0xd58] sm:$0xff] %v3128_v11 }
  0xd8   :  { %1437 = vst [vmem:[#allocation5 + $0xd68] sm:$0xff] %v3128_v11  ;;  %1438 = vst [vmem:[#allocation5 + $0xd70] sm:$0xff] %v3128_v11  ;;  %v1196_v11 = vmul.f32 %v2685_v57, %v2901_v45 }
  0xd9   :  { %1299 = vst [vmem:[#allocation5 + $0x918] sm:$0xff] %v3132_v37  ;;  %1302 = vst [vmem:[#allocation5 + $0x930] sm:$0xff] %v3136_v38  ;;  %v1200_v37 = vmul.f32 %v2692_v59, %v2901_v45  ;;  %v1203_v38 = vmul.f32 %v2695_v60, %v2901_v45 }
  0xda   :  { %1305 = vst [vmem:[#allocation5 + $0x948] sm:$0xff] %v3140_v42  ;;  %1308 = vst [vmem:[#allocation5 + $0x960] sm:$0xff] %v3144_v47  ;;  %v1206_v42 = vmul.f32 %v2703_v63, %v2901_v45  ;;  %v1209_v47 = vmul.f32 %v2709_v3, %v2901_v45 }
  0xdb   :  { %1311 = vst [vmem:[#allocation5 + $0x978] sm:$0xff] %v1166_v48  ;;  %1314 = vst [vmem:[#allocation5 + $0x990] sm:$0xff] %v1169_v56  ;;  %v1212_v48 = vmul.f32 %v2716_v8, %v2901_v45  ;;  %v1215_v56 = vmul.f32 %v2726_v17, %v2901_v45 }
  0xdc   :  { %1317 = vst [vmem:[#allocation5 + $0x9a8] sm:$0xff] %v1172_v62  ;;  %1320 = vst [vmem:[#allocation5 + $0x9c0] sm:$0xff] %v1175_v4  ;;  %v1218_v62 = vmul.f32 %v2734_v24, %v2901_v45  ;;  %v1221_v4 = vmul.f32 %v2737_v25, %v2901_v45 }
  0xdd   :  { %1323 = vst [vmem:[#allocation5 + $0x9d8] sm:$0xff] %v1178_v6  ;;  %1326 = vst [vmem:[#allocation5 + $0x9f0] sm:$0xff] %v1181_v61  ;;  %v1224_v6 = vmul.f32 %v2745_v28, %v2901_v45  ;;  %v1227_v61 = vmul.f32 %v2751_v30, %v2901_v45 }
  0xde   :  { %1329 = vst [vmem:[#allocation5 + $0xa08] sm:$0xff] %v1184_v9  ;;  %1332 = vst [vmem:[#allocation5 + $0xa20] sm:$0xff] %v1187_v16  ;;  %v1230_v9 = vmul.f32 %v2758_v34, %v2901_v45  ;;  %v1233_v16 = vmul.f32 %v2768_v46, %v2901_v45 }
  0xdf   :  { %1335 = vst [vmem:[#allocation5 + $0xa38] sm:$0xff] %v1190_v27  ;;  %1338 = vst [vmem:[#allocation5 + $0xa50] sm:$0xff] %v1193_v33  ;;  %v1236_v27 = vmul.f32 %v2776_v49, %v2901_v45  ;;  %v1239_v33 = vmul.f32 %v2779_v51, %v2901_v45 }
  0xe0   :  { %1341 = vst [vmem:[#allocation5 + $0xa68] sm:$0xff] %v1196_v11  ;;  %1345 = vst [vmem:[#allocation5 + $0xa88] sm:$0xff] %v1200_v37  ;;  %v1242_v11 = vmul.f32 %v2787_v55, %v2901_v45  ;;  %v1245_v37 = vmul.f32 %v2793_v58, %v2901_v45 }
  0xe1   :  { %1348 = vst [vmem:[#allocation5 + $0xaa0] sm:$0xff] %v1203_v38  ;;  %1351 = vst [vmem:[#allocation5 + $0xab8] sm:$0xff] %v1206_v42  ;;  %v1249_v38 = vmul.f32 %v2809_v10, %v2901_v45  ;;  %v1252_v42 = vmul.f32 %v2812_v12, %v2901_v45 }
  0xe2   :  { %1354 = vst [vmem:[#allocation5 + $0xad0] sm:$0xff] %v1209_v47  ;;  %1357 = vst [vmem:[#allocation5 + $0xae8] sm:$0xff] %v1212_v48  ;;  %v1255_v47 = vmul.f32 %v2821_v19, %v2901_v45  ;;  %v1258_v48 = vmul.f32 %v2824_v21, %v2901_v45 }
  0xe3   :  { %1360 = vst [vmem:[#allocation5 + $0xb00] sm:$0xff] %v1215_v56  ;;  %1363 = vst [vmem:[#allocation5 + $0xb18] sm:$0xff] %v1218_v62  ;;  %v1261_v56 = vmul.f32 %v2835_v29, %v2901_v45  ;;  %v1264_v62 = vmul.f32 %v2838_v31, %v2901_v45 }
  0xe4   :  { %1366 = vst [vmem:[#allocation5 + $0xb30] sm:$0xff] %v1221_v4  ;;  %1369 = vst [vmem:[#allocation5 + $0xb48] sm:$0xff] %v1224_v6  ;;  %v1267_v4 = vmul.f32 %v2849_v40, %v2901_v45  ;;  %v1270_v6 = vmul.f32 %v2858_v52, %v2901_v45 }
  0xe5   :  { %1372 = vst [vmem:[#allocation5 + $0xb60] sm:$0xff] %v1227_v61  ;;  %1375 = vst [vmem:[#allocation5 + $0xb78] sm:$0xff] %v1230_v9  ;;  %v1273_v61 = vmul.f32 %v2866_v0, %v2901_v45  ;;  %v1276_v9 = vmul.f32 %v2873_v50, %v2901_v45 }
  0xe6   :  { %1378 = vst [vmem:[#allocation5 + $0xb90] sm:$0xff] %v1233_v16  ;;  %1381 = vst [vmem:[#allocation5 + $0xba8] sm:$0xff] %v1236_v27  ;;  %v1279_v16 = vmul.f32 %v2876_v5, %v2901_v45  ;;  %v1282_v27 = vmul.f32 %v2884_v13, %v2901_v45 }
  0xe7   :  { %1384 = vst [vmem:[#allocation5 + $0xbc0] sm:$0xff] %v1239_v33  ;;  %1387 = vst [vmem:[#allocation5 + $0xbd8] sm:$0xff] %v1242_v11  ;;  %v1285_v33 = vmul.f32 %v2890_v26, %v2901_v45  ;;  %v1288_v11 = vmul.f32 %v2911_v54, %v2901_v45 }
  0xe8   :  { %1390 = vst [vmem:[#allocation5 + $0xbf0] sm:$0xff] %v1245_v37  ;;  %1394 = vst [vmem:[#allocation5 + $0xc10] sm:$0xff] %v1249_v38  ;;  %v1291_v37 = vmul.f32 %v2914_v1, %v2901_v45  ;;  %v1294_v38 = vmul.f32 %v2930_v2, %v2901_v45 }
  0xe9   :  { %1397 = vst [vmem:[#allocation5 + $0xc28] sm:$0xff] %v1252_v42  ;;  %1400 = vst [vmem:[#allocation5 + $0xc40] sm:$0xff] %v1255_v47  ;;  %v3335_v42 = vstv %s3270_s18 }
  0xea   :  { %1403 = vst [vmem:[#allocation5 + $0xc58] sm:$0xff] %v1258_v48  ;;  %1406 = vst [vmem:[#allocation5 + $0xc70] sm:$0xff] %v1261_v56  ;;  %v1442_v47 = vmul.f32 %v2456_v7, %v3335_v42  ;;  %v3340_v48 = vmul.f32 0.0, %v3335_v42  ;;  %v3344_v56 = vmul.f32 %v2478_v14, %v3335_v42  ;;  %v3352_v45 = vmul.f32 %v2492_v18, %v3335_v42 }
  0xeb   :  { %1409 = vst [vmem:[#allocation5 + $0xc88] sm:$0xff] %v1264_v62  ;;  %1412 = vst [vmem:[#allocation5 + $0xca0] sm:$0xff] %v1267_v4  ;;  %v3348_v62 = vmul.f32 %v2481_v15, %v3335_v42  ;;  %v3356_v7 = vmul.f32 %v2598_v20, %v3335_v42  ;;  %v3360_v4 = vmul.f32 %v2609_v22, %v3335_v42 }
  0xec   :  { %1415 = vst [vmem:[#allocation5 + $0xcb8] sm:$0xff] %v1270_v6  ;;  %1418 = vst [vmem:[#allocation5 + $0xcd0] sm:$0xff] %v1273_v61  ;;  %v3364_v14 = vmul.f32 %v2612_v23, %v3335_v42  ;;  %v1463_v15 = vmul.f32 %v2626_v32, %v3335_v42  ;;  %v1466_v18 = vmul.f32 %v2634_v35, %v3335_v42 }
  0xed   :  { %1421 = vst [vmem:[#allocation5 + $0xce8] sm:$0xff] %v1276_v9  ;;  %1424 = vst [vmem:[#allocation5 + $0xd00] sm:$0xff] %v1279_v16  ;;  %v1469_v20 = vmul.f32 %v2637_v36, %v3335_v42  ;;  %v1472_v22 = vmul.f32 %v2645_v39, %v3335_v42  ;;  %v1475_v23 = vmul.f32 %v2651_v41, %v3335_v42 }
  0xee   :  { %1427 = vst [vmem:[#allocation5 + $0xd18] sm:$0xff] %v1282_v27  ;;  %1430 = vst [vmem:[#allocation5 + $0xd30] sm:$0xff] %v1285_v33  ;;  %v1478_v32 = vmul.f32 %v2658_v43, %v3335_v42  ;;  %v1481_v35 = vmul.f32 %v2661_v44, %v3335_v42  ;;  %v1484_v36 = vmul.f32 %v2677_v53, %v3335_v42 }
  0xef   :  { %1433 = vst [vmem:[#allocation5 + $0xd48] sm:$0xff] %v1288_v11  ;;  %1436 = vst [vmem:[#allocation5 + $0xd60] sm:$0xff] %v1291_v37  ;;  %v1487_v39 = vmul.f32 %v2685_v57, %v3335_v42  ;;  %v1491_v6 = vmul.f32 %v2692_v59, %v3335_v42  ;;  %v1494_v41 = vmul.f32 %v2695_v60, %v3335_v42 }
  0xf0   :  { %1439 = vst [vmem:[#allocation5 + $0xd78] sm:$0xff] %v1294_v38  ;;  %1587 = vst [vmem:[#allocation5 + $0xd80] sm:$0xff] %v1442_v47  ;;  %v1497_v43 = vmul.f32 %v2703_v63, %v3335_v42  ;;  %v1500_v44 = vmul.f32 %v2709_v3, %v3335_v42  ;;  %v1503_v53 = vmul.f32 %v2716_v8, %v3335_v42 }
  0xf1   :  { %1588 = vst [vmem:[#allocation5 + $0xd88] sm:$0xff] %v3340_v48  ;;  %1589 = vst [vmem:[#allocation5 + $0xd90] sm:$0xff] %v3340_v48  ;;  %v1506_v57 = vmul.f32 %v2726_v17, %v3335_v42  ;;  %v1509_v59 = vmul.f32 %v2734_v24, %v3335_v42  ;;  %v1512_v60 = vmul.f32 %v2737_v25, %v3335_v42 }
  0xf2   :  { %1591 = vst [vmem:[#allocation5 + $0xda0] sm:$0xff] %v3340_v48  ;;  %1592 = vst [vmem:[#allocation5 + $0xda8] sm:$0xff] %v3340_v48  ;;  %v1515_v63 = vmul.f32 %v2745_v28, %v3335_v42  ;;  %v1518_v3 = vmul.f32 %v2751_v30, %v3335_v42  ;;  %v1521_v8 = vmul.f32 %v2758_v34, %v3335_v42 }
  0xf3   :  { %1594 = vst [vmem:[#allocation5 + $0xdb8] sm:$0xff] %v3340_v48  ;;  %1595 = vst [vmem:[#allocation5 + $0xdc0] sm:$0xff] %v3340_v48  ;;  %v1524_v17 = vmul.f32 %v2768_v46, %v3335_v42  ;;  %v1527_v24 = vmul.f32 %v2776_v49, %v3335_v42  ;;  %v1530_v25 = vmul.f32 %v2779_v51, %v3335_v42 }
  0xf4   :  { %1597 = vst [vmem:[#allocation5 + $0xdd0] sm:$0xff] %v3340_v48  ;;  %1598 = vst [vmem:[#allocation5 + $0xdd8] sm:$0xff] %v3340_v48  ;;  %v1533_v28 = vmul.f32 %v2787_v55, %v3335_v42  ;;  %v1536_v30 = vmul.f32 %v2793_v58, %v3335_v42  ;;  %v1540_v34 = vmul.f32 %v2809_v10, %v3335_v42 }
  0xf5   :  { %1600 = vst [vmem:[#allocation5 + $0xde8] sm:$0xff] %v3340_v48  ;;  %1601 = vst [vmem:[#allocation5 + $0xdf0] sm:$0xff] %v3340_v48  ;;  %v1543_v46 = vmul.f32 %v2812_v12, %v3335_v42  ;;  %v1546_v49 = vmul.f32 %v2821_v19, %v3335_v42  ;;  %v1549_v51 = vmul.f32 %v2824_v21, %v3335_v42 }
  0xf6   :  { %1603 = vst [vmem:[#allocation5 + $0xe00] sm:$0xff] %v3340_v48  ;;  %1604 = vst [vmem:[#allocation5 + $0xe08] sm:$0xff] %v3340_v48  ;;  %v1552_v55 = vmul.f32 %v2835_v29, %v3335_v42  ;;  %v1555_v58 = vmul.f32 %v2838_v31, %v3335_v42  ;;  %v1558_v10 = vmul.f32 %v2849_v40, %v3335_v42 }
  0xf7   :  { %1606 = vst [vmem:[#allocation5 + $0xe18] sm:$0xff] %v3340_v48  ;;  %1607 = vst [vmem:[#allocation5 + $0xe20] sm:$0xff] %v3340_v48  ;;  %v1561_v12 = vmul.f32 %v2858_v52, %v3335_v42  ;;  %v1564_v19 = vmul.f32 %v2866_v0, %v3335_v42  ;;  %v1567_v21 = vmul.f32 %v2873_v50, %v3335_v42 }
  0xf8   :  { %1609 = vst [vmem:[#allocation5 + $0xe30] sm:$0xff] %v3340_v48  ;;  %1610 = vst [vmem:[#allocation5 + $0xe38] sm:$0xff] %v3340_v48  ;;  %v1570_v29 = vmul.f32 %v2876_v5, %v3335_v42  ;;  %v1573_v31 = vmul.f32 %v2884_v13, %v3335_v42  ;;  %v1576_v40 = vmul.f32 %v2890_v26, %v3335_v42 }
  0xf9   :  { %1612 = vst [vmem:[#allocation5 + $0xe48] sm:$0xff] %v3340_v48  ;;  %1613 = vst [vmem:[#allocation5 + $0xe50] sm:$0xff] %v3340_v48  ;;  %v1579_v52 = vmul.f32 %v2911_v54, %v3335_v42  ;;  %v1582_v0 = vmul.f32 %v2914_v1, %v3335_v42  ;;  %v1585_v50 = vmul.f32 %v2930_v2, %v3335_v42 }
  0xfa   :  { %1615 = vst [vmem:[#allocation5 + $0xe60] sm:$0xff] %v3340_v48  ;;  %1616 = vst [vmem:[#allocation5 + $0xe68] sm:$0xff] %v3340_v48 }
  0xfb   :  { %1618 = vst [vmem:[#allocation5 + $0xe78] sm:$0xff] %v3340_v48  ;;  %1619 = vst [vmem:[#allocation5 + $0xe80] sm:$0xff] %v3340_v48 }
  0xfc   :  { %1621 = vst [vmem:[#allocation5 + $0xe90] sm:$0xff] %v3340_v48  ;;  %1622 = vst [vmem:[#allocation5 + $0xe98] sm:$0xff] %v3340_v48 }
  0xfd   :  { %1624 = vst [vmem:[#allocation5 + $0xea8] sm:$0xff] %v3340_v48  ;;  %1625 = vst [vmem:[#allocation5 + $0xeb0] sm:$0xff] %v3340_v48 }
  0xfe   :  { %1627 = vst [vmem:[#allocation5 + $0xec0] sm:$0xff] %v3340_v48  ;;  %1628 = vst [vmem:[#allocation5 + $0xec8] sm:$0xff] %v3340_v48 }
  0xff   :  { %1630 = vst [vmem:[#allocation5 + $0xed8] sm:$0xff] %v3340_v48  ;;  %1631 = vst [vmem:[#allocation5 + $0xee0] sm:$0xff] %v3340_v48 }
 0x100   :  { %1633 = vst [vmem:[#allocation5 + $0xef0] sm:$0xff] %v3340_v48  ;;  %1634 = vst [vmem:[#allocation5 + $0xef8] sm:$0xff] %v3340_v48 }
 0x101   :  { %1635 = vst [vmem:[#allocation5 + $0xf00] sm:$0xff] %v3340_v48  ;;  %1637 = vst [vmem:[#allocation5 + $0xf10] sm:$0xff] %v3340_v48 }
 0x102   :  { %1638 = vst [vmem:[#allocation5 + $0xf18] sm:$0xff] %v3340_v48  ;;  %1640 = vst [vmem:[#allocation5 + $0xf28] sm:$0xff] %v3340_v48 }
 0x103   :  { %1641 = vst [vmem:[#allocation5 + $0xf30] sm:$0xff] %v3340_v48  ;;  %1643 = vst [vmem:[#allocation5 + $0xf40] sm:$0xff] %v3340_v48 }
 0x104   :  { %1644 = vst [vmem:[#allocation5 + $0xf48] sm:$0xff] %v3340_v48  ;;  %1646 = vst [vmem:[#allocation5 + $0xf58] sm:$0xff] %v3340_v48 }
 0x105   :  { %1647 = vst [vmem:[#allocation5 + $0xf60] sm:$0xff] %v3340_v48  ;;  %1649 = vst [vmem:[#allocation5 + $0xf70] sm:$0xff] %v3340_v48 }
 0x106   :  { %1650 = vst [vmem:[#allocation5 + $0xf78] sm:$0xff] %v3340_v48  ;;  %1652 = vst [vmem:[#allocation5 + $0xf88] sm:$0xff] %v3340_v48 }
 0x107   :  { %1653 = vst [vmem:[#allocation5 + $0xf90] sm:$0xff] %v3340_v48  ;;  %1655 = vst [vmem:[#allocation5 + $0xfa0] sm:$0xff] %v3340_v48 }
 0x108   :  { %1656 = vst [vmem:[#allocation5 + $0xfa8] sm:$0xff] %v3340_v48  ;;  %1658 = vst [vmem:[#allocation5 + $0xfb8] sm:$0xff] %v3340_v48 }
 0x109   :  { %1659 = vst [vmem:[#allocation5 + $0xfc0] sm:$0xff] %v3340_v48  ;;  %1661 = vst [vmem:[#allocation5 + $0xfd0] sm:$0xff] %v3340_v48 }
 0x10a   :  { %1662 = vst [vmem:[#allocation5 + $0xfd8] sm:$0xff] %v3340_v48  ;;  %1664 = vst [vmem:[#allocation5 + $0xfe8] sm:$0xff] %v3340_v48 }
 0x10b   :  { %1665 = vst [vmem:[#allocation5 + $0xff0] sm:$0xff] %v3340_v48  ;;  %1667 = vst [vmem:[#allocation5 + $0x1000] sm:$0xff] %v3340_v48 }
 0x10c   :  { %1668 = vst [vmem:[#allocation5 + $0x1008] sm:$0xff] %v3340_v48  ;;  %1670 = vst [vmem:[#allocation5 + $0x1018] sm:$0xff] %v3340_v48 }
 0x10d   :  { %1671 = vst [vmem:[#allocation5 + $0x1020] sm:$0xff] %v3340_v48  ;;  %1673 = vst [vmem:[#allocation5 + $0x1030] sm:$0xff] %v3340_v48 }
 0x10e   :  { %1674 = vst [vmem:[#allocation5 + $0x1038] sm:$0xff] %v3340_v48  ;;  %1676 = vst [vmem:[#allocation5 + $0x1048] sm:$0xff] %v3340_v48 }
 0x10f   :  { %1677 = vst [vmem:[#allocation5 + $0x1050] sm:$0xff] %v3340_v48  ;;  %1679 = vst [vmem:[#allocation5 + $0x1060] sm:$0xff] %v3340_v48 }
 0x110   :  { %1680 = vst [vmem:[#allocation5 + $0x1068] sm:$0xff] %v3340_v48  ;;  %1682 = vst [vmem:[#allocation5 + $0x1078] sm:$0xff] %v3340_v48 }
 0x111   :  { %1683 = vst [vmem:[#allocation5 + $0x1080] sm:$0xff] %v3340_v48  ;;  %1684 = vst [vmem:[#allocation5 + $0x1088] sm:$0xff] %v3340_v48 }
 0x112   :  { %1686 = vst [vmem:[#allocation5 + $0x1098] sm:$0xff] %v3340_v48  ;;  %1687 = vst [vmem:[#allocation5 + $0x10a0] sm:$0xff] %v3340_v48 }
 0x113   :  { %1689 = vst [vmem:[#allocation5 + $0x10b0] sm:$0xff] %v3340_v48  ;;  %1690 = vst [vmem:[#allocation5 + $0x10b8] sm:$0xff] %v3340_v48 }
 0x114   :  { %1692 = vst [vmem:[#allocation5 + $0x10c8] sm:$0xff] %v3340_v48  ;;  %1693 = vst [vmem:[#allocation5 + $0x10d0] sm:$0xff] %v3340_v48 }
 0x115   :  { %1695 = vst [vmem:[#allocation5 + $0x10e0] sm:$0xff] %v3340_v48  ;;  %1696 = vst [vmem:[#allocation5 + $0x10e8] sm:$0xff] %v3340_v48 }
 0x116   :  { %1698 = vst [vmem:[#allocation5 + $0x10f8] sm:$0xff] %v3340_v48  ;;  %1699 = vst [vmem:[#allocation5 + $0x1100] sm:$0xff] %v3340_v48 }
 0x117   :  { %1701 = vst [vmem:[#allocation5 + $0x1110] sm:$0xff] %v3340_v48  ;;  %1702 = vst [vmem:[#allocation5 + $0x1118] sm:$0xff] %v3340_v48 }
 0x118   :  { %1704 = vst [vmem:[#allocation5 + $0x1128] sm:$0xff] %v3340_v48  ;;  %1705 = vst [vmem:[#allocation5 + $0x1130] sm:$0xff] %v3340_v48 }
 0x119   :  { %1707 = vst [vmem:[#allocation5 + $0x1140] sm:$0xff] %v3340_v48  ;;  %1708 = vst [vmem:[#allocation5 + $0x1148] sm:$0xff] %v3340_v48 }
 0x11a   :  { %1710 = vst [vmem:[#allocation5 + $0x1158] sm:$0xff] %v3340_v48  ;;  %1711 = vst [vmem:[#allocation5 + $0x1160] sm:$0xff] %v3340_v48 }
 0x11b   :  { %1713 = vst [vmem:[#allocation5 + $0x1170] sm:$0xff] %v3340_v48  ;;  %1714 = vst [vmem:[#allocation5 + $0x1178] sm:$0xff] %v3340_v48 }
 0x11c   :  { %1716 = vst [vmem:[#allocation5 + $0x1188] sm:$0xff] %v3340_v48  ;;  %1717 = vst [vmem:[#allocation5 + $0x1190] sm:$0xff] %v3340_v48 }
 0x11d   :  { %1719 = vst [vmem:[#allocation5 + $0x11a0] sm:$0xff] %v3340_v48  ;;  %1720 = vst [vmem:[#allocation5 + $0x11a8] sm:$0xff] %v3340_v48 }
 0x11e   :  { %1722 = vst [vmem:[#allocation5 + $0x11b8] sm:$0xff] %v3340_v48  ;;  %1723 = vst [vmem:[#allocation5 + $0x11c0] sm:$0xff] %v3340_v48 }
 0x11f   :  { %1725 = vst [vmem:[#allocation5 + $0x11d0] sm:$0xff] %v3340_v48  ;;  %1726 = vst [vmem:[#allocation5 + $0x11d8] sm:$0xff] %v3340_v48 }
 0x120   :  { %1728 = vst [vmem:[#allocation5 + $0x11e8] sm:$0xff] %v3340_v48  ;;  %1729 = vst [vmem:[#allocation5 + $0x11f0] sm:$0xff] %v3340_v48 }
 0x121   :  { %1590 = vst [vmem:[#allocation5 + $0xd98] sm:$0xff] %v3344_v56  ;;  %1593 = vst [vmem:[#allocation5 + $0xdb0] sm:$0xff] %v3348_v62 }
 0x122   :  { %1596 = vst [vmem:[#allocation5 + $0xdc8] sm:$0xff] %v3352_v45  ;;  %1599 = vst [vmem:[#allocation5 + $0xde0] sm:$0xff] %v3356_v7 }
 0x123   :  { %1602 = vst [vmem:[#allocation5 + $0xdf8] sm:$0xff] %v3360_v4  ;;  %1605 = vst [vmem:[#allocation5 + $0xe10] sm:$0xff] %v3364_v14 }
 0x124   :  { %1608 = vst [vmem:[#allocation5 + $0xe28] sm:$0xff] %v1463_v15  ;;  %1611 = vst [vmem:[#allocation5 + $0xe40] sm:$0xff] %v1466_v18 }
 0x125   :  { %1614 = vst [vmem:[#allocation5 + $0xe58] sm:$0xff] %v1469_v20  ;;  %1617 = vst [vmem:[#allocation5 + $0xe70] sm:$0xff] %v1472_v22 }
 0x126   :  { %1620 = vst [vmem:[#allocation5 + $0xe88] sm:$0xff] %v1475_v23  ;;  %1623 = vst [vmem:[#allocation5 + $0xea0] sm:$0xff] %v1478_v32 }
 0x127   :  { %1626 = vst [vmem:[#allocation5 + $0xeb8] sm:$0xff] %v1481_v35  ;;  %1629 = vst [vmem:[#allocation5 + $0xed0] sm:$0xff] %v1484_v36 }
 0x128   :  { %1632 = vst [vmem:[#allocation5 + $0xee8] sm:$0xff] %v1487_v39  ;;  %1636 = vst [vmem:[#allocation5 + $0xf08] sm:$0xff] %v1491_v6 }
 0x129   :  { %1639 = vst [vmem:[#allocation5 + $0xf20] sm:$0xff] %v1494_v41  ;;  %1642 = vst [vmem:[#allocation5 + $0xf38] sm:$0xff] %v1497_v43 }
 0x12a   :  { %1645 = vst [vmem:[#allocation5 + $0xf50] sm:$0xff] %v1500_v44  ;;  %1648 = vst [vmem:[#allocation5 + $0xf68] sm:$0xff] %v1503_v53 }
 0x12b   :  { %1651 = vst [vmem:[#allocation5 + $0xf80] sm:$0xff] %v1506_v57  ;;  %1654 = vst [vmem:[#allocation5 + $0xf98] sm:$0xff] %v1509_v59 }
 0x12c   :  { %1657 = vst [vmem:[#allocation5 + $0xfb0] sm:$0xff] %v1512_v60  ;;  %1660 = vst [vmem:[#allocation5 + $0xfc8] sm:$0xff] %v1515_v63 }
 0x12d   :  { %1663 = vst [vmem:[#allocation5 + $0xfe0] sm:$0xff] %v1518_v3  ;;  %1666 = vst [vmem:[#allocation5 + $0xff8] sm:$0xff] %v1521_v8 }
 0x12e   :  { %1669 = vst [vmem:[#allocation5 + $0x1010] sm:$0xff] %v1524_v17  ;;  %1672 = vst [vmem:[#allocation5 + $0x1028] sm:$0xff] %v1527_v24 }
 0x12f   :  { %1675 = vst [vmem:[#allocation5 + $0x1040] sm:$0xff] %v1530_v25  ;;  %1678 = vst [vmem:[#allocation5 + $0x1058] sm:$0xff] %v1533_v28 }
 0x130   :  { %1681 = vst [vmem:[#allocation5 + $0x1070] sm:$0xff] %v1536_v30  ;;  %1685 = vst [vmem:[#allocation5 + $0x1090] sm:$0xff] %v1540_v34 }
 0x131   :  { %1688 = vst [vmem:[#allocation5 + $0x10a8] sm:$0xff] %v1543_v46  ;;  %1691 = vst [vmem:[#allocation5 + $0x10c0] sm:$0xff] %v1546_v49 }
 0x132   :  { %1694 = vst [vmem:[#allocation5 + $0x10d8] sm:$0xff] %v1549_v51  ;;  %1697 = vst [vmem:[#allocation5 + $0x10f0] sm:$0xff] %v1552_v55 }
 0x133   :  { %1700 = vst [vmem:[#allocation5 + $0x1108] sm:$0xff] %v1555_v58  ;;  %1703 = vst [vmem:[#allocation5 + $0x1120] sm:$0xff] %v1558_v10 }
 0x134   :  { %1706 = vst [vmem:[#allocation5 + $0x1138] sm:$0xff] %v1561_v12  ;;  %1709 = vst [vmem:[#allocation5 + $0x1150] sm:$0xff] %v1564_v19 }
 0x135   :  { %1712 = vst [vmem:[#allocation5 + $0x1168] sm:$0xff] %v1567_v21  ;;  %1715 = vst [vmem:[#allocation5 + $0x1180] sm:$0xff] %v1570_v29 }
 0x136   :  { %1718 = vst [vmem:[#allocation5 + $0x1198] sm:$0xff] %v1573_v31  ;;  %1721 = vst [vmem:[#allocation5 + $0x11b0] sm:$0xff] %v1576_v40 }
 0x137   :  { %1724 = vst [vmem:[#allocation5 + $0x11c8] sm:$0xff] %v1579_v52  ;;  %1727 = vst [vmem:[#allocation5 + $0x11e0] sm:$0xff] %v1582_v0 }
 0x138   :  { %1730 = vst [vmem:[#allocation5 + $0x11f8] sm:$0xff] %v1585_v50 }
 0x139   :  { %2404 = shalt.err (!%p2401_p7)
}
 0x13a   :  { %s2405_s24 = scalar_lea.hbm %s3563_s1, 73728 }
 0x13b   :  { %p2406_p8 = scmp.ne.s32.totalorder %s3563_s1, %s2405_s24  ;;  %p2409_p9 = scmp.lt.u32.totalorder %s2405_s24, %s3563_s1 }
 0x13d   :  { %p2411_p10 = pnand %p2409_p9, %p2406_p8 }
 0x13f   :  { %2414 = shalt.err (!%p2411_p10)
}
 0x140   :  { %s2422_s29 = smov 384   ;;  %s2423_s30 = smov 24  }
 0x141   :  { %2321 = dma.vmem_to_hbm [thread:$0]  %s2316_s20, 73728, %s3563_s1, [#allocation3], %s2422_s29, %s2422_s29, %s2423_s30  }
 0x142   :  { %2417 = dma.done.wait [#allocation3], 73728  }
 0x143   :  { %2418 = vsyncadd [#allocation3], 4294893568 }
 0x144   :  { %2325 = vsyncpa [#allocation3], 1 }
 0x145   :  { %2326 = vsyncpa [#allocation4], 1 }

</bundles_post_ra>
